<compile_context>
chip_gen: v6e
topology: v6e:2x2x1
jax: 0.10.0
libtpu: 0.0.40
codegen_flags: <defaults>
</compile_context>

<pallas_src>
import math

import jax
import jax.numpy as jnp
from jax.experimental import pallas as pl
from jax.experimental.pallas import tpu as pltpu

# ---------------- model hyper-parameters (small, synthetic) ----------------
B = 2            # batch
S = 8            # sequence length
H = 32           # hidden size
FFN = 64         # intermediate size
NUM_HEADS = 2
HEAD_DIM = H // NUM_HEADS
NUM_LAYERS = 2
VOCAB = 128
TYPE_VOCAB = 2
MAX_POS = 16
LN_EPS = 1e-12


# ---------------------------- kernel helpers --------------------------------
def _ln(x, gamma, beta, eps=LN_EPS):
    mu = jnp.mean(x, axis=-1, keepdims=True)
    var = jnp.mean((x - mu) ** 2, axis=-1, keepdims=True)
    return (x - mu) * jax.lax.rsqrt(var + eps) * gamma + beta


def encoder_stack_kernel(x_ref, m_ref, eg_ref, eb_ref,
                         wqkv_ref, bqkv_ref, wo_ref, bo_ref,
                         ln1_g_ref, ln1_b_ref, w1_ref, fb1_ref,
                         w2_ref, fb2_ref, ln2_g_ref, ln2_b_ref,
                         o_ref, x_scr):
    """One grid step = one transformer layer of one encoder.

    x_scr (VMEM scratch, f32, (B*S, H)) keeps the activation resident across
    the layer axis; the embedding LayerNorm initializes it at layer 0.
    """
    layer = pl.program_id(1)

    @pl.when(layer == 0)
    def _():
        x0 = x_ref[0].astype(jnp.float32)                       # (B*S, H)
        x_scr[...] = _ln(x0, eg_ref[0], eb_ref[0])               # embedding LN

    x = x_scr[...]                                               # (B*S, H) f32
    neg_bias = m_ref[0]                                          # (B, 1, S) additive mask

    # ---- fused QKV projection (bf16 MXU operands, f32 accumulation) --------
    xb = x.astype(jnp.bfloat16)
    qkv = (jnp.dot(xb, wqkv_ref[0, 0], preferred_element_type=jnp.float32)
           + bqkv_ref[0, 0])                                     # (B*S, 3H) f32
    qkv = qkv.reshape(B, S, 3 * H)

    # ---- multi-head attention, batched over B via 3-D einsums --------------
    wo = wo_ref[0, 0]                                            # (H, H) bf16
    scale = 1.0 / math.sqrt(HEAD_DIM)
    attn = jnp.zeros((B * S, H), jnp.float32)
    for h in range(NUM_HEADS):                                   # tiny static unroll
        off = h * HEAD_DIM
        qh = qkv[:, :, off:off + HEAD_DIM]                       # (B, S, HD)
        kh = qkv[:, :, H + off:H + off + HEAD_DIM]
        vh = qkv[:, :, 2 * H + off:2 * H + off + HEAD_DIM]

        s = jnp.einsum('bqd,bkd->bqk', qh, kh,
                       preferred_element_type=jnp.float32) * scale   # (B, S, S)
        s = s + neg_bias                                         # mask keys (bcast over q)
        s = s - jnp.max(s, axis=-1, keepdims=True)
        p = jnp.exp(s)
        p = p * pl.reciprocal(jnp.sum(p, axis=-1, keepdims=True), approx=True)

        ctx = jnp.einsum('bqk,bkd->bqd', p, vh,
                         preferred_element_type=jnp.float32)     # (B, S, HD)
        # Fold the concat-over-heads into the output projection:
        #   concat(ctx_h) @ Wo == sum_h ctx_h @ Wo[h*HD:(h+1)*HD, :]
        attn = attn + jnp.dot(ctx.reshape(B * S, HEAD_DIM).astype(jnp.bfloat16),
                              wo[off:off + HEAD_DIM, :],
                              preferred_element_type=jnp.float32)
    attn = attn + bo_ref[0, 0]

    h1 = _ln(x + attn, ln1_g_ref[0, 0], ln1_b_ref[0, 0])         # f32

    ffn = (jnp.dot(h1.astype(jnp.bfloat16), w1_ref[0, 0],
                   preferred_element_type=jnp.float32) + fb1_ref[0, 0])
    # TODO(synk): HF BERT/DPR uses the exact erf GELU; tanh approximation kept
    # (Mosaic-safe, small numerical divergence).
    ffn = jax.nn.gelu(ffn, approximate=True)
    ffn = (jnp.dot(ffn.astype(jnp.bfloat16), w2_ref[0, 0],
                   preferred_element_type=jnp.float32) + fb2_ref[0, 0])

    x_new = _ln(h1 + ffn, ln2_g_ref[0, 0], ln2_b_ref[0, 0])
    x_scr[...] = x_new

    @pl.when(layer == pl.num_programs(1) - 1)
    def _():
        o_ref[0] = x_new.astype(o_ref.dtype)


# ------------------------------ pallas wrapper -------------------------------
def _enc_spec(arr):
    """Block over leading encoder axis only (array shape (E, ...))."""
    nd = arr.ndim
    return pl.BlockSpec((1,) + arr.shape[1:],
                        lambda e, l, _nd=nd: (e,) + (0,) * (_nd - 1))


def _per_layer_spec(arr):
    """Block over (encoder, layer) leading axes (array shape (E, L, ...))."""
    nd = arr.ndim
    return pl.BlockSpec((1, 1) + arr.shape[2:],
                        lambda e, l, _nd=nd: (e, l) + (0,) * (_nd - 2))


def fused_bert_encoders(x_emb, neg_bias, sp):
    """x_emb: (E, B*S, H) f32 pre-LN embeddings; neg_bias: (E, B, 1, S) f32.

    Returns sequence output (E, B*S, H) f32.  One pallas_call for everything.
    """
    E, BS, Hn = x_emb.shape
    L = sp["wqkv"].shape[1]
    weights = [sp[k] for k in ("wqkv", "bqkv", "wo", "bo",
                               "ln1_g", "ln1_b", "w1", "fb1",
                               "w2", "fb2", "ln2_g", "ln2_b")]

    grid_spec = pltpu.PrefetchScalarGridSpec(
        num_scalar_prefetch=0,
        grid=(E, L),
        in_specs=[
            pl.BlockSpec((1, BS, Hn), lambda e, l: (e, 0, 0)),        # embeddings
            pl.BlockSpec((1,) + neg_bias.shape[1:],
                         lambda e, l: (e, 0, 0, 0)),                  # additive mask
            _enc_spec(sp["emb_ln_g"]),
            _enc_spec(sp["emb_ln_b"]),
        ] + [_per_layer_spec(w) for w in weights],
        out_specs=pl.BlockSpec((1, BS, Hn), lambda e, l: (e, 0, 0)),  # resident over l
        scratch_shapes=[pltpu.VMEM((BS, Hn), jnp.float32)],           # activation
    )
    return pl.pallas_call(
        encoder_stack_kernel,
        out_shape=jax.ShapeDtypeStruct((E, BS, Hn), jnp.float32),
        grid_spec=grid_spec,
        compiler_params=pltpu.CompilerParams(
            dimension_semantics=("parallel", "arbitrary")),
    )(x_emb, neg_bias, sp["emb_ln_g"], sp["emb_ln_b"], *weights)


# --------------------------- params / embeddings ------------------------------
def init_encoder_params(key):
    keys = jax.random.split(key, 4 + NUM_LAYERS)
    std = 0.02
    params = {
        "word_emb": jax.random.normal(keys[0], (VOCAB, H), jnp.float32) * std,
        "seg_emb":  jax.random.normal(keys[1], (TYPE_VOCAB, H), jnp.float32) * std,
        "pos_emb":  jax.random.normal(keys[2], (MAX_POS, H), jnp.float32) * std,
        "emb_ln_g": jnp.ones((1, H), jnp.float32),
        "emb_ln_b": jnp.zeros((1, H), jnp.float32),
        "layers": [],
    }
    for li in range(NUM_LAYERS):
        lk = jax.random.split(keys[4 + li], 6)
        layer = {
            "wq": jax.random.normal(lk[0], (H, H), jnp.float32) * std,
            "bq": jnp.zeros((1, H), jnp.float32),
            "wk": jax.random.normal(lk[1], (H, H), jnp.float32) * std,
            "bk": jnp.zeros((1, H), jnp.float32),
            "wv": jax.random.normal(lk[2], (H, H), jnp.float32) * std,
            "bv": jnp.zeros((1, H), jnp.float32),
            "wo": jax.random.normal(lk[3], (H, H), jnp.float32) * std,
            "bo": jnp.zeros((1, H), jnp.float32),
            "ln1_g": jnp.ones((1, H), jnp.float32),
            "ln1_b": jnp.zeros((1, H), jnp.float32),
            "w1": jax.random.normal(lk[4], (H, FFN), jnp.float32) * std,
            "b1": jnp.zeros((1, FFN), jnp.float32),
            "w2": jax.random.normal(lk[5], (FFN, H), jnp.float32) * std,
            "b2": jnp.zeros((1, H), jnp.float32),
            "ln2_g": jnp.ones((1, H), jnp.float32),
            "ln2_b": jnp.zeros((1, H), jnp.float32),
        }
        params["layers"].append(layer)
    return params


def stack_encoder_params(params_list):
    """Stack encoders' per-layer weights into (E, L, ...) arrays.

    QKV is pre-fused to (H, 3H); matmul weights are cast to bf16 for the MXU;
    biases and LayerNorm params stay float32 (f32 accumulation / VPU math).
    """
    def per_layer(fn, dtype=jnp.float32):
        return jnp.stack(
            [jnp.stack([fn(p["layers"][l]) for l in range(NUM_LAYERS)])
             for p in params_list]).astype(dtype)

    return {
        "wqkv": per_layer(lambda l: jnp.concatenate([l["wq"], l["wk"], l["wv"]], axis=1),
                          jnp.bfloat16),                               # (E, L, H, 3H)
        "bqkv": per_layer(lambda l: jnp.concatenate([l["bq"], l["bk"], l["bv"]], axis=1)),
        "wo":   per_layer(lambda l: l["wo"], jnp.bfloat16),
        "bo":   per_layer(lambda l: l["bo"]),
        "ln1_g": per_layer(lambda l: l["ln1_g"]),
        "ln1_b": per_layer(lambda l: l["ln1_b"]),
        "w1":   per_layer(lambda l: l["w1"], jnp.bfloat16),
        "fb1":  per_layer(lambda l: l["b1"]),
        "w2":   per_layer(lambda l: l["w2"], jnp.bfloat16),
        "fb2":  per_layer(lambda l: l["b2"]),
        "ln2_g": per_layer(lambda l: l["ln2_g"]),
        "ln2_b": per_layer(lambda l: l["ln2_b"]),
        "emb_ln_g": jnp.stack([p["emb_ln_g"] for p in params_list]),   # (E, 1, H)
        "emb_ln_b": jnp.stack([p["emb_ln_b"] for p in params_list]),
    }


def _embed(emb_params, ids, segments):
    """Embedding gathers (glue, plain JAX). Returns pre-LayerNorm (B, S, H)."""
    Bn, Sn = ids.shape
    return (emb_params["word_emb"][ids]
            + emb_params["seg_emb"][segments]
            + emb_params["pos_emb"][None, :Sn, :])


def _neg_bias(attn_mask):
    """Additive key mask, precomputed once outside the kernel."""
    Bn, Sn = attn_mask.shape
    return ((1.0 - attn_mask.astype(jnp.float32)) * (-1e9)).reshape(Bn, 1, Sn)


@jax.jit
def _biencoder_forward(stacked, q_emb_params, c_emb_params,
                       q_ids, q_seg, q_mask, c_ids, c_seg, c_mask):
    """Question + context encoders in one fused pallas_call (E=2)."""
    xq = _embed(q_emb_params, q_ids, q_seg)                      # (B, S, H)
    xc = _embed(c_emb_params, c_ids, c_seg)
    Bn, Sn, Hn = xq.shape
    x_emb = jnp.stack([xq, xc]).reshape(2, Bn * Sn, Hn)
    neg_bias = jnp.stack([_neg_bias(q_mask), _neg_bias(c_mask)])  # (2, B, 1, S)
    seq = fused_bert_encoders(x_emb, neg_bias, stacked)           # (2, B*S, H)
    seq = seq.reshape(2, Bn, Sn, Hn)
    # DPR HFBertEncoder pooling: [CLS] token
    return seq[0], seq[0, :, 0, :], seq[1], seq[1, :, 0, :]


# ------------------------------ BiEncoder ------------------------------------
class BiEncoder:
    """Pallas/JAX port of CORA mDPR BiEncoder forward pass."""

    def __init__(self, question_params, ctx_params,
                 fix_q_encoder: bool = False, fix_ctx_encoder: bool = False):
        self.question_params = question_params
        self.ctx_params = ctx_params
        self.fix_q_encoder = fix_q_encoder
        self.fix_ctx_encoder = fix_ctx_encoder
        # Pre-stack both encoders' transformer weights once: (E=2, L, ...) arrays.
        self.stacked = stack_encoder_params([question_params, ctx_params])
        self.q_emb = {k: question_params[k] for k in ("word_emb", "seg_emb", "pos_emb")}
        self.c_emb = {k: ctx_params[k] for k in ("word_emb", "seg_emb", "pos_emb")}

    @staticmethod
    def get_representation(params, ids, segments, attn_mask, fix_encoder=False):
        """Single-encoder path (API parity with the PyTorch module)."""
        sequence_output = pooled_output = hidden_states = None
        if ids is not None:
            stacked = stack_encoder_params([params])
            emb_p = {k: params[k] for k in ("word_emb", "seg_emb", "pos_emb")}
            x = _embed(emb_p, ids, segments)
            Bn, Sn, Hn = x.shape
            seq = fused_bert_encoders(x.reshape(1, Bn * Sn, Hn),
                                      _neg_bias(attn_mask)[None], stacked)
            sequence_output = seq.reshape(Bn, Sn, Hn)
            pooled_output = sequence_output[:, 0, :]
            if fix_encoder:
                # TODO(synk): torch.no_grad()/requires_grad_ training-mode handling
                # has no forward-pass effect; stop_gradient is the closest analogue.
                sequence_output = jax.lax.stop_gradient(sequence_output)
                pooled_output = jax.lax.stop_gradient(pooled_output)
        return sequence_output, pooled_output, hidden_states

    def __call__(self, question_ids, question_segments, question_attn_mask,
                 context_ids, ctx_segments, ctx_attn_mask):
        if question_ids is None or context_ids is None:
            # Fallback: per-encoder path (matches original control flow).
            _qs, q_pooled, _qh = self.get_representation(
                self.question_params, question_ids, question_segments,
                question_attn_mask, self.fix_q_encoder)
            _cs, ctx_pooled, _ch = self.get_representation(
                self.ctx_params, context_ids, ctx_segments,
                ctx_attn_mask, self.fix_ctx_encoder)
            return q_pooled, ctx_pooled

        # Hot path: both encoders fused into a single pallas_call.
        _q_seq, q_pooled, _c_seq, ctx_pooled = _biencoder_forward(
            self.stacked, self.q_emb, self.c_emb,
            question_ids, question_segments, question_attn_mask,
            context_ids, ctx_segments, ctx_attn_mask)
        if self.fix_q_encoder:
            q_pooled = jax.lax.stop_gradient(q_pooled)
        if self.fix_ctx_encoder:
            ctx_pooled = jax.lax.stop_gradient(ctx_pooled)
        return q_pooled, ctx_pooled


# ----------------------------------- main ------------------------------------
if __name__ == "__main__":
    root = jax.random.PRNGKey(0)
    k_qp, k_cp, k_qi, k_ci = jax.random.split(root, 4)

    q_params = init_encoder_params(k_qp)
    c_params = init_encoder_params(k_cp)
    biencoder = BiEncoder(q_params, c_params)

    question_ids = jax.random.randint(k_qi, (B, S), 0, VOCAB, dtype=jnp.int32)
    context_ids = jax.random.randint(k_ci, (B, S), 0, VOCAB, dtype=jnp.int32)
    question_segments = jnp.zeros((B, S), jnp.int32)
    ctx_segments = jnp.zeros((B, S), jnp.int32)
    # mask: first example fully valid, second example has 2 padded positions
    question_attn_mask = jnp.array(
        [[1] * S, [1] * (S - 2) + [0, 0]], dtype=jnp.float32)
    ctx_attn_mask = jnp.array(
        [[1] * S, [1] * (S - 2) + [0, 0]], dtype=jnp.float32)

    q_pooled, ctx_pooled = biencoder(
        question_ids, question_segments, question_attn_mask,
        context_ids, ctx_segments, ctx_attn_mask)

    jax.block_until_ready((q_pooled, ctx_pooled))
    assert q_pooled.shape == (B, H) and ctx_pooled.shape == (B, H)
    assert jnp.all(jnp.isfinite(q_pooled)) and jnp.all(jnp.isfinite(ctx_pooled))
    print("KERNEL_OK")
</pallas_src>

<mosaic_0001>
module attributes {stable_mosaic.version = 11 : i64} {
  func.func @encoder_stack_kernel(%arg0: i32, %arg1: i32, %arg2: memref<1x16x32xf32, #tpu.memory_space<vmem>>, %arg3: memref<1x2x1x8xf32, #tpu.memory_space<vmem>>, %arg4: memref<1x1x32xf32, #tpu.memory_space<vmem>>, %arg5: memref<1x1x32xf32, #tpu.memory_space<vmem>>, %arg6: memref<1x1x32x96xbf16, #tpu.memory_space<vmem>>, %arg7: memref<1x1x1x96xf32, #tpu.memory_space<vmem>>, %arg8: memref<1x1x32x32xbf16, #tpu.memory_space<vmem>>, %arg9: memref<1x1x1x32xf32, #tpu.memory_space<vmem>>, %arg10: memref<1x1x1x32xf32, #tpu.memory_space<vmem>>, %arg11: memref<1x1x1x32xf32, #tpu.memory_space<vmem>>, %arg12: memref<1x1x32x64xbf16, #tpu.memory_space<vmem>>, %arg13: memref<1x1x1x64xf32, #tpu.memory_space<vmem>>, %arg14: memref<1x1x64x32xbf16, #tpu.memory_space<vmem>>, %arg15: memref<1x1x1x32xf32, #tpu.memory_space<vmem>>, %arg16: memref<1x1x1x32xf32, #tpu.memory_space<vmem>>, %arg17: memref<1x1x1x32xf32, #tpu.memory_space<vmem>>, %arg18: memref<1x16x32xf32, #tpu.memory_space<vmem>>, %arg19: memref<16x32xf32, #tpu.memory_space<vmem>>) attributes {dimension_semantics = [#tpu.dimension_semantics<parallel>, #tpu.dimension_semantics<arbitrary>], iteration_bounds = array<i64: 2, 2>, scalar_prefetch = 0 : i64, scratch_operands = 1 : i64, tpu.core_type = #tpu.core_type<tc>, window_params = [{transform_indices = @transform_0, window_bounds = array<i64: 1, 16, 32>}, {transform_indices = @transform_1, window_bounds = array<i64: 1, 2, 1, 8>}, {transform_indices = @transform_2, window_bounds = array<i64: 1, 1, 32>}, {transform_indices = @transform_3, window_bounds = array<i64: 1, 1, 32>}, {transform_indices = @transform_4, window_bounds = array<i64: 1, 1, 32, 96>}, {transform_indices = @transform_5, window_bounds = array<i64: 1, 1, 1, 96>}, {transform_indices = @transform_6, window_bounds = array<i64: 1, 1, 32, 32>}, {transform_indices = @transform_7, window_bounds = array<i64: 1, 1, 1, 32>}, {transform_indices = @transform_8, window_bounds = array<i64: 1, 1, 1, 32>}, {transform_indices = @transform_9, window_bounds = array<i64: 1, 1, 1, 32>}, {transform_indices = @transform_10, window_bounds = array<i64: 1, 1, 32, 64>}, {transform_indices = @transform_11, window_bounds = array<i64: 1, 1, 1, 64>}, {transform_indices = @transform_12, window_bounds = array<i64: 1, 1, 64, 32>}, {transform_indices = @transform_13, window_bounds = array<i64: 1, 1, 1, 32>}, {transform_indices = @transform_14, window_bounds = array<i64: 1, 1, 1, 32>}, {transform_indices = @transform_15, window_bounds = array<i64: 1, 1, 1, 32>}, {transform_indices = @transform_16, window_bounds = array<i64: 1, 16, 32>}]} {
    %c0_i32 = arith.constant 0 : i32
    %0 = arith.cmpi eq, %arg1, %c0_i32 : i32
    %1 = arith.extui %0 : i1 to i32
    %c0_i32_0 = arith.constant 0 : i32
    %2 = arith.cmpi ne, %1, %c0_i32_0 : i32
    scf.if %2 {
      %c0_86 = arith.constant 0 : index
      %c0_87 = arith.constant 0 : index
      %c0_88 = arith.constant 0 : index
      %157 = vector.load %arg2[%c0_86, %c0_87, %c0_88] : memref<1x16x32xf32, #tpu.memory_space<vmem>>, vector<1x16x32xf32>
      %158 = vector.shape_cast %157 : vector<1x16x32xf32> to vector<16x32xf32>
      %c0_89 = arith.constant 0 : index
      %c0_90 = arith.constant 0 : index
      %c0_91 = arith.constant 0 : index
      %159 = vector.load %arg4[%c0_89, %c0_90, %c0_91] : memref<1x1x32xf32, #tpu.memory_space<vmem>>, vector<1x1x32xf32>
      %160 = vector.shape_cast %159 : vector<1x1x32xf32> to vector<1x32xf32>
      %c0_92 = arith.constant 0 : index
      %c0_93 = arith.constant 0 : index
      %c0_94 = arith.constant 0 : index
      %161 = vector.load %arg5[%c0_92, %c0_93, %c0_94] : memref<1x1x32xf32, #tpu.memory_space<vmem>>, vector<1x1x32xf32>
      %162 = vector.shape_cast %161 : vector<1x1x32xf32> to vector<1x32xf32>
      %cst_95 = arith.constant dense<0.000000e+00> : vector<16xf32>
      %163 = vector.multi_reduction <add>, %158, %cst_95 [1] : vector<16x32xf32> to vector<16xf32>
      %164 = vector.shape_cast %163 : vector<16xf32> to vector<16x1xf32>
      %cst_96 = arith.constant 3.200000e+01 : f32
      %165 = vector.broadcast %cst_96 : f32 to vector<16x1xf32>
      %166 = arith.divf %164, %165 : vector<16x1xf32>
      %167 = vector.broadcast %166 : vector<16x1xf32> to vector<16x32xf32>
      %168 = arith.subf %158, %167 : vector<16x32xf32>
      %169 = arith.mulf %168, %168 : vector<16x32xf32>
      %cst_97 = arith.constant dense<0.000000e+00> : vector<16xf32>
      %170 = vector.multi_reduction <add>, %169, %cst_97 [1] : vector<16x32xf32> to vector<16xf32>
      %171 = vector.shape_cast %170 : vector<16xf32> to vector<16x1xf32>
      %cst_98 = arith.constant 3.200000e+01 : f32
      %172 = vector.broadcast %cst_98 : f32 to vector<16x1xf32>
      %173 = arith.divf %171, %172 : vector<16x1xf32>
      %174 = vector.broadcast %166 : vector<16x1xf32> to vector<16x32xf32>
      %175 = arith.subf %158, %174 : vector<16x32xf32>
      %cst_99 = arith.constant 9.99999996E-13 : f32
      %176 = vector.broadcast %cst_99 : f32 to vector<16x1xf32>
      %177 = arith.addf %173, %176 : vector<16x1xf32>
      %178 = math.rsqrt %177 : vector<16x1xf32>
      %179 = vector.broadcast %178 : vector<16x1xf32> to vector<16x32xf32>
      %180 = arith.mulf %175, %179 : vector<16x32xf32>
      %181 = vector.broadcast %160 : vector<1x32xf32> to vector<16x32xf32>
      %182 = arith.mulf %180, %181 : vector<16x32xf32>
      %183 = vector.broadcast %162 : vector<1x32xf32> to vector<16x32xf32>
      %184 = arith.addf %182, %183 : vector<16x32xf32>
      %c0_100 = arith.constant 0 : index
      %c0_101 = arith.constant 0 : index
      %185 = vector.load %arg19[%c0_100, %c0_101] : memref<16x32xf32, #tpu.memory_space<vmem>>, vector<16x32xf32>
      tpu.vector_store %arg19[%c0_100, %c0_101], %184 {strides = array<i32>} : memref<16x32xf32, #tpu.memory_space<vmem>>, vector<16x32xf32>,
    } else {
    }
    %c0 = arith.constant 0 : index
    %c0_1 = arith.constant 0 : index
    %3 = vector.load %arg19[%c0, %c0_1] : memref<16x32xf32, #tpu.memory_space<vmem>>, vector<16x32xf32>
    %c0_2 = arith.constant 0 : index
    %c0_3 = arith.constant 0 : index
    %c0_4 = arith.constant 0 : index
    %c0_5 = arith.constant 0 : index
    %4 = vector.load %arg3[%c0_2, %c0_3, %c0_4, %c0_5] : memref<1x2x1x8xf32, #tpu.memory_space<vmem>>, vector<1x2x1x8xf32>
    %5 = vector.shape_cast %4 : vector<1x2x1x8xf32> to vector<2x1x8xf32>
    %6 = arith.truncf %3 : vector<16x32xf32> to vector<16x32xbf16>
    %c0_6 = arith.constant 0 : index
    %c0_7 = arith.constant 0 : index
    %c0_8 = arith.constant 0 : index
    %c0_9 = arith.constant 0 : index
    %7 = vector.load %arg6[%c0_6, %c0_7, %c0_8, %c0_9] : memref<1x1x32x96xbf16, #tpu.memory_space<vmem>>, vector<1x1x32x96xbf16>
    %8 = vector.shape_cast %7 : vector<1x1x32x96xbf16> to vector<32x96xbf16>
    %cst = arith.constant dense<0.000000e+00> : vector<16x96xf32>
    %9 = tpu.matmul %6, %8, %cst {dimension_numbers = #tpu.dot_dimension_numbers<[1], [0], [0], [1], [0, 0, 1, 1], [], []>} : vector<16x32xbf16>, vector<32x96xbf16>, vector<16x96xf32> -> vector<16x96xf32>
    %c0_10 = arith.constant 0 : index
    %c0_11 = arith.constant 0 : index
    %c0_12 = arith.constant 0 : index
    %c0_13 = arith.constant 0 : index
    %10 = vector.load %arg7[%c0_10, %c0_11, %c0_12, %c0_13] : memref<1x1x1x96xf32, #tpu.memory_space<vmem>>, vector<1x1x1x96xf32>
    %11 = vector.shape_cast %10 : vector<1x1x1x96xf32> to vector<1x96xf32>
    %12 = vector.broadcast %11 : vector<1x96xf32> to vector<16x96xf32>
    %13 = arith.addf %9, %12 : vector<16x96xf32>
    %14 = vector.shape_cast %13 : vector<16x96xf32> to vector<2x8x96xf32>
    %c0_14 = arith.constant 0 : index
    %c0_15 = arith.constant 0 : index
    %c0_16 = arith.constant 0 : index
    %c0_17 = arith.constant 0 : index
    %15 = vector.load %arg8[%c0_14, %c0_15, %c0_16, %c0_17] : memref<1x1x32x32xbf16, #tpu.memory_space<vmem>>, vector<1x1x32x32xbf16>
    %16 = vector.shape_cast %15 : vector<1x1x32x32xbf16> to vector<32x32xbf16>
    %cst_18 = arith.constant 0.000000e+00 : f32
    %17 = vector.broadcast %cst_18 : f32 to vector<16x32xf32>
    %18 = vector.extract_strided_slice %14 {offsets = [0, 0, 0], sizes = [2, 8, 16], strides = [1, 1, 1]} : vector<2x8x96xf32> to vector<2x8x16xf32>
    %19 = vector.extract_strided_slice %14 {offsets = [0, 0, 32], sizes = [2, 8, 16], strides = [1, 1, 1]} : vector<2x8x96xf32> to vector<2x8x16xf32>
    %20 = vector.extract_strided_slice %14 {offsets = [0, 0, 64], sizes = [2, 8, 16], strides = [1, 1, 1]} : vector<2x8x96xf32> to vector<2x8x16xf32>
    "tpu.trace_start"() <{level = 10 : i32, message = "bqd,bkd->bqk"}> : () -> ()
    %cst_19 = arith.constant dense<0.000000e+00> : vector<2x8x8xf32>
    %21 = tpu.matmul %18, %19, %cst_19 {dimension_numbers = #tpu.dot_dimension_numbers<[2], [2], [1], [1], [0, 0, 0, 1, 1, 1], [0], [0]>} : vector<2x8x16xf32>, vector<2x8x16xf32>, vector<2x8x8xf32> -> vector<2x8x8xf32>
    "tpu.trace_stop"() : () -> ()
    %cst_20 = arith.constant 2.500000e-01 : f32
    %22 = vector.broadcast %cst_20 : f32 to vector<2x8x8xf32>
    %23 = arith.mulf %21, %22 : vector<2x8x8xf32>
    %24 = vector.broadcast %5 : vector<2x1x8xf32> to vector<2x8x8xf32>
    %25 = arith.addf %23, %24 : vector<2x8x8xf32>
    %cst_21 = arith.constant dense<0xFF800000> : vector<2x8xf32>
    %26 = vector.multi_reduction <maximumf>, %25, %cst_21 [2] : vector<2x8x8xf32> to vector<2x8xf32>
    %27 = vector.shape_cast %26 : vector<2x8xf32> to vector<2x8x1xf32>
    %28 = vector.broadcast %27 : vector<2x8x1xf32> to vector<2x8x8xf32>
    %29 = arith.subf %25, %28 : vector<2x8x8xf32>
    %30 = math.exp %29 : vector<2x8x8xf32>
    %cst_22 = arith.constant dense<0.000000e+00> : vector<2x8xf32>
    %31 = vector.multi_reduction <add>, %30, %cst_22 [2] : vector<2x8x8xf32> to vector<2x8xf32>
    %32 = vector.shape_cast %31 : vector<2x8xf32> to vector<2x8x1xf32>
    %33 = tpu.reciprocal %32 {approx = true} : vector<2x8x1xf32> -> vector<2x8x1xf32>
    %34 = vector.broadcast %33 : vector<2x8x1xf32> to vector<2x8x8xf32>
    %35 = arith.mulf %30, %34 : vector<2x8x8xf32>
    "tpu.trace_start"() <{level = 10 : i32, message = "bqk,bkd->bqd"}> : () -> ()
    %cst_23 = arith.constant dense<0.000000e+00> : vector<2x8x16xf32>
    %36 = tpu.matmul %35, %20, %cst_23 {dimension_numbers = #tpu.dot_dimension_numbers<[2], [1], [1], [2], [0, 0, 0, 1, 1, 2], [0], [0]>} : vector<2x8x8xf32>, vector<2x8x16xf32>, vector<2x8x16xf32> -> vector<2x8x16xf32>
    "tpu.trace_stop"() : () -> ()
    %37 = vector.shape_cast %36 : vector<2x8x16xf32> to vector<16x16xf32>
    %38 = arith.truncf %37 : vector<16x16xf32> to vector<16x16xbf16>
    %39 = vector.extract_strided_slice %16 {offsets = [0, 0], sizes = [16, 32], strides = [1, 1]} : vector<32x32xbf16> to vector<16x32xbf16>
    %cst_24 = arith.constant dense<0.000000e+00> : vector<16x32xf32>
    %40 = tpu.matmul %38, %39, %cst_24 {dimension_numbers = #tpu.dot_dimension_numbers<[1], [0], [0], [1], [0, 0, 1, 1], [], []>} : vector<16x16xbf16>, vector<16x32xbf16>, vector<16x32xf32> -> vector<16x32xf32>
    %41 = arith.addf %17, %40 : vector<16x32xf32>
    %42 = vector.extract_strided_slice %14 {offsets = [0, 0, 16], sizes = [2, 8, 16], strides = [1, 1, 1]} : vector<2x8x96xf32> to vector<2x8x16xf32>
    %43 = vector.extract_strided_slice %14 {offsets = [0, 0, 48], sizes = [2, 8, 16], strides = [1, 1, 1]} : vector<2x8x96xf32> to vector<2x8x16xf32>
    %44 = vector.extract_strided_slice %14 {offsets = [0, 0, 80], sizes = [2, 8, 16], strides = [1, 1, 1]} : vector<2x8x96xf32> to vector<2x8x16xf32>
    "tpu.trace_start"() <{level = 10 : i32, message = "bqd,bkd->bqk"}> : () -> ()
    %cst_25 = arith.constant dense<0.000000e+00> : vector<2x8x8xf32>
    %45 = tpu.matmul %42, %43, %cst_25 {dimension_numbers = #tpu.dot_dimension_numbers<[2], [2], [1], [1], [0, 0, 0, 1, 1, 1], [0], [0]>} : vector<2x8x16xf32>, vector<2x8x16xf32>, vector<2x8x8xf32> -> vector<2x8x8xf32>
    "tpu.trace_stop"() : () -> ()
    %cst_26 = arith.constant 2.500000e-01 : f32
    %46 = vector.broadcast %cst_26 : f32 to vector<2x8x8xf32>
    %47 = arith.mulf %45, %46 : vector<2x8x8xf32>
    %48 = vector.broadcast %5 : vector<2x1x8xf32> to vector<2x8x8xf32>
    %49 = arith.addf %47, %48 : vector<2x8x8xf32>
    %cst_27 = arith.constant dense<0xFF800000> : vector<2x8xf32>
    %50 = vector.multi_reduction <maximumf>, %49, %cst_27 [2] : vector<2x8x8xf32> to vector<2x8xf32>
    %51 = vector.shape_cast %50 : vector<2x8xf32> to vector<2x8x1xf32>
    %52 = vector.broadcast %51 : vector<2x8x1xf32> to vector<2x8x8xf32>
    %53 = arith.subf %49, %52 : vector<2x8x8xf32>
    %54 = math.exp %53 : vector<2x8x8xf32>
    %cst_28 = arith.constant dense<0.000000e+00> : vector<2x8xf32>
    %55 = vector.multi_reduction <add>, %54, %cst_28 [2] : vector<2x8x8xf32> to vector<2x8xf32>
    %56 = vector.shape_cast %55 : vector<2x8xf32> to vector<2x8x1xf32>
    %57 = tpu.reciprocal %56 {approx = true} : vector<2x8x1xf32> -> vector<2x8x1xf32>
    %58 = vector.broadcast %57 : vector<2x8x1xf32> to vector<2x8x8xf32>
    %59 = arith.mulf %54, %58 : vector<2x8x8xf32>
    "tpu.trace_start"() <{level = 10 : i32, message = "bqk,bkd->bqd"}> : () -> ()
    %cst_29 = arith.constant dense<0.000000e+00> : vector<2x8x16xf32>
    %60 = tpu.matmul %59, %44, %cst_29 {dimension_numbers = #tpu.dot_dimension_numbers<[2], [1], [1], [2], [0, 0, 0, 1, 1, 2], [0], [0]>} : vector<2x8x8xf32>, vector<2x8x16xf32>, vector<2x8x16xf32> -> vector<2x8x16xf32>
    "tpu.trace_stop"() : () -> ()
    %61 = vector.shape_cast %60 : vector<2x8x16xf32> to vector<16x16xf32>
    %62 = arith.truncf %61 : vector<16x16xf32> to vector<16x16xbf16>
    %63 = vector.extract_strided_slice %16 {offsets = [16, 0], sizes = [16, 32], strides = [1, 1]} : vector<32x32xbf16> to vector<16x32xbf16>
    %cst_30 = arith.constant dense<0.000000e+00> : vector<16x32xf32>
    %64 = tpu.matmul %62, %63, %cst_30 {dimension_numbers = #tpu.dot_dimension_numbers<[1], [0], [0], [1], [0, 0, 1, 1], [], []>} : vector<16x16xbf16>, vector<16x32xbf16>, vector<16x32xf32> -> vector<16x32xf32>
    %65 = arith.addf %41, %64 : vector<16x32xf32>
    %c0_31 = arith.constant 0 : index
    %c0_32 = arith.constant 0 : index
    %c0_33 = arith.constant 0 : index
    %c0_34 = arith.constant 0 : index
    %66 = vector.load %arg9[%c0_31, %c0_32, %c0_33, %c0_34] : memref<1x1x1x32xf32, #tpu.memory_space<vmem>>, vector<1x1x1x32xf32>
    %67 = vector.shape_cast %66 : vector<1x1x1x32xf32> to vector<1x32xf32>
    %68 = vector.broadcast %67 : vector<1x32xf32> to vector<16x32xf32>
    %69 = arith.addf %65, %68 : vector<16x32xf32>
    %70 = arith.addf %3, %69 : vector<16x32xf32>
    %c0_35 = arith.constant 0 : index
    %c0_36 = arith.constant 0 : index
    %c0_37 = arith.constant 0 : index
    %c0_38 = arith.constant 0 : index
    %71 = vector.load %arg10[%c0_35, %c0_36, %c0_37, %c0_38] : memref<1x1x1x32xf32, #tpu.memory_space<vmem>>, vector<1x1x1x32xf32>
    %72 = vector.shape_cast %71 : vector<1x1x1x32xf32> to vector<1x32xf32>
    %c0_39 = arith.constant 0 : index
    %c0_40 = arith.constant 0 : index
    %c0_41 = arith.constant 0 : index
    %c0_42 = arith.constant 0 : index
    %73 = vector.load %arg11[%c0_39, %c0_40, %c0_41, %c0_42] : memref<1x1x1x32xf32, #tpu.memory_space<vmem>>, vector<1x1x1x32xf32>
    %74 = vector.shape_cast %73 : vector<1x1x1x32xf32> to vector<1x32xf32>
    %cst_43 = arith.constant dense<0.000000e+00> : vector<16xf32>
    %75 = vector.multi_reduction <add>, %70, %cst_43 [1] : vector<16x32xf32> to vector<16xf32>
    %76 = vector.shape_cast %75 : vector<16xf32> to vector<16x1xf32>
    %cst_44 = arith.constant 3.200000e+01 : f32
    %77 = vector.broadcast %cst_44 : f32 to vector<16x1xf32>
    %78 = arith.divf %76, %77 : vector<16x1xf32>
    %79 = vector.broadcast %78 : vector<16x1xf32> to vector<16x32xf32>
    %80 = arith.subf %70, %79 : vector<16x32xf32>
    %81 = arith.mulf %80, %80 : vector<16x32xf32>
    %cst_45 = arith.constant dense<0.000000e+00> : vector<16xf32>
    %82 = vector.multi_reduction <add>, %81, %cst_45 [1] : vector<16x32xf32> to vector<16xf32>
    %83 = vector.shape_cast %82 : vector<16xf32> to vector<16x1xf32>
    %cst_46 = arith.constant 3.200000e+01 : f32
    %84 = vector.broadcast %cst_46 : f32 to vector<16x1xf32>
    %85 = arith.divf %83, %84 : vector<16x1xf32>
    %86 = vector.broadcast %78 : vector<16x1xf32> to vector<16x32xf32>
    %87 = arith.subf %70, %86 : vector<16x32xf32>
    %cst_47 = arith.constant 9.99999996E-13 : f32
    %88 = vector.broadcast %cst_47 : f32 to vector<16x1xf32>
    %89 = arith.addf %85, %88 : vector<16x1xf32>
    %90 = math.rsqrt %89 : vector<16x1xf32>
    %91 = vector.broadcast %90 : vector<16x1xf32> to vector<16x32xf32>
    %92 = arith.mulf %87, %91 : vector<16x32xf32>
    %93 = vector.broadcast %72 : vector<1x32xf32> to vector<16x32xf32>
    %94 = arith.mulf %92, %93 : vector<16x32xf32>
    %95 = vector.broadcast %74 : vector<1x32xf32> to vector<16x32xf32>
    %96 = arith.addf %94, %95 : vector<16x32xf32>
    %97 = arith.truncf %96 : vector<16x32xf32> to vector<16x32xbf16>
    %c0_48 = arith.constant 0 : index
    %c0_49 = arith.constant 0 : index
    %c0_50 = arith.constant 0 : index
    %c0_51 = arith.constant 0 : index
    %98 = vector.load %arg12[%c0_48, %c0_49, %c0_50, %c0_51] : memref<1x1x32x64xbf16, #tpu.memory_space<vmem>>, vector<1x1x32x64xbf16>
    %99 = vector.shape_cast %98 : vector<1x1x32x64xbf16> to vector<32x64xbf16>
    %cst_52 = arith.constant dense<0.000000e+00> : vector<16x64xf32>
    %100 = tpu.matmul %97, %99, %cst_52 {dimension_numbers = #tpu.dot_dimension_numbers<[1], [0], [0], [1], [0, 0, 1, 1], [], []>} : vector<16x32xbf16>, vector<32x64xbf16>, vector<16x64xf32> -> vector<16x64xf32>
    %c0_53 = arith.constant 0 : index
    %c0_54 = arith.constant 0 : index
    %c0_55 = arith.constant 0 : index
    %c0_56 = arith.constant 0 : index
    %101 = vector.load %arg13[%c0_53, %c0_54, %c0_55, %c0_56] : memref<1x1x1x64xf32, #tpu.memory_space<vmem>>, vector<1x1x1x64xf32>
    %102 = vector.shape_cast %101 : vector<1x1x1x64xf32> to vector<1x64xf32>
    %103 = vector.broadcast %102 : vector<1x64xf32> to vector<16x64xf32>
    %104 = arith.addf %100, %103 : vector<16x64xf32>
    %105 = arith.mulf %104, %104 : vector<16x64xf32>
    %106 = arith.mulf %104, %105 : vector<16x64xf32>
    %cst_57 = arith.constant 4.471500e-02 : f32
    %107 = vector.broadcast %cst_57 : f32 to vector<16x64xf32>
    %108 = arith.mulf %107, %106 : vector<16x64xf32>
    %109 = arith.addf %104, %108 : vector<16x64xf32>
    %cst_58 = arith.constant 0.797884583 : f32
    %110 = vector.broadcast %cst_58 : f32 to vector<16x64xf32>
    %111 = arith.mulf %110, %109 : vector<16x64xf32>
    %112 = math.tanh %111 : vector<16x64xf32>
    %cst_59 = arith.constant 1.000000e+00 : f32
    %113 = vector.broadcast %cst_59 : f32 to vector<16x64xf32>
    %114 = arith.addf %113, %112 : vector<16x64xf32>
    %cst_60 = arith.constant 5.000000e-01 : f32
    %115 = vector.broadcast %cst_60 : f32 to vector<16x64xf32>
    %116 = arith.mulf %115, %114 : vector<16x64xf32>
    %117 = arith.mulf %104, %116 : vector<16x64xf32>
    %118 = arith.truncf %117 : vector<16x64xf32> to vector<16x64xbf16>
    %c0_61 = arith.constant 0 : index
    %c0_62 = arith.constant 0 : index
    %c0_63 = arith.constant 0 : index
    %c0_64 = arith.constant 0 : index
    %119 = vector.load %arg14[%c0_61, %c0_62, %c0_63, %c0_64] : memref<1x1x64x32xbf16, #tpu.memory_space<vmem>>, vector<1x1x64x32xbf16>
    %120 = vector.shape_cast %119 : vector<1x1x64x32xbf16> to vector<64x32xbf16>
    %cst_65 = arith.constant dense<0.000000e+00> : vector<16x32xf32>
    %121 = tpu.matmul %118, %120, %cst_65 {dimension_numbers = #tpu.dot_dimension_numbers<[1], [0], [0], [1], [0, 0, 1, 1], [], []>} : vector<16x64xbf16>, vector<64x32xbf16>, vector<16x32xf32> -> vector<16x32xf32>
    %c0_66 = arith.constant 0 : index
    %c0_67 = arith.constant 0 : index
    %c0_68 = arith.constant 0 : index
    %c0_69 = arith.constant 0 : index
    %122 = vector.load %arg15[%c0_66, %c0_67, %c0_68, %c0_69] : memref<1x1x1x32xf32, #tpu.memory_space<vmem>>, vector<1x1x1x32xf32>
    %123 = vector.shape_cast %122 : vector<1x1x1x32xf32> to vector<1x32xf32>
    %124 = vector.broadcast %123 : vector<1x32xf32> to vector<16x32xf32>
    %125 = arith.addf %121, %124 : vector<16x32xf32>
    %126 = arith.addf %96, %125 : vector<16x32xf32>
    %c0_70 = arith.constant 0 : index
    %c0_71 = arith.constant 0 : index
    %c0_72 = arith.constant 0 : index
    %c0_73 = arith.constant 0 : index
    %127 = vector.load %arg16[%c0_70, %c0_71, %c0_72, %c0_73] : memref<1x1x1x32xf32, #tpu.memory_space<vmem>>, vector<1x1x1x32xf32>
    %128 = vector.shape_cast %127 : vector<1x1x1x32xf32> to vector<1x32xf32>
    %c0_74 = arith.constant 0 : index
    %c0_75 = arith.constant 0 : index
    %c0_76 = arith.constant 0 : index
    %c0_77 = arith.constant 0 : index
    %129 = vector.load %arg17[%c0_74, %c0_75, %c0_76, %c0_77] : memref<1x1x1x32xf32, #tpu.memory_space<vmem>>, vector<1x1x1x32xf32>
    %130 = vector.shape_cast %129 : vector<1x1x1x32xf32> to vector<1x32xf32>
    %cst_78 = arith.constant dense<0.000000e+00> : vector<16xf32>
    %131 = vector.multi_reduction <add>, %126, %cst_78 [1] : vector<16x32xf32> to vector<16xf32>
    %132 = vector.shape_cast %131 : vector<16xf32> to vector<16x1xf32>
    %cst_79 = arith.constant 3.200000e+01 : f32
    %133 = vector.broadcast %cst_79 : f32 to vector<16x1xf32>
    %134 = arith.divf %132, %133 : vector<16x1xf32>
    %135 = vector.broadcast %134 : vector<16x1xf32> to vector<16x32xf32>
    %136 = arith.subf %126, %135 : vector<16x32xf32>
    %137 = arith.mulf %136, %136 : vector<16x32xf32>
    %cst_80 = arith.constant dense<0.000000e+00> : vector<16xf32>
    %138 = vector.multi_reduction <add>, %137, %cst_80 [1] : vector<16x32xf32> to vector<16xf32>
    %139 = vector.shape_cast %138 : vector<16xf32> to vector<16x1xf32>
    %cst_81 = arith.constant 3.200000e+01 : f32
    %140 = vector.broadcast %cst_81 : f32 to vector<16x1xf32>
    %141 = arith.divf %139, %140 : vector<16x1xf32>
    %142 = vector.broadcast %134 : vector<16x1xf32> to vector<16x32xf32>
    %143 = arith.subf %126, %142 : vector<16x32xf32>
    %cst_82 = arith.constant 9.99999996E-13 : f32
    %144 = vector.broadcast %cst_82 : f32 to vector<16x1xf32>
    %145 = arith.addf %141, %144 : vector<16x1xf32>
    %146 = math.rsqrt %145 : vector<16x1xf32>
    %147 = vector.broadcast %146 : vector<16x1xf32> to vector<16x32xf32>
    %148 = arith.mulf %143, %147 : vector<16x32xf32>
    %149 = vector.broadcast %128 : vector<1x32xf32> to vector<16x32xf32>
    %150 = arith.mulf %148, %149 : vector<16x32xf32>
    %151 = vector.broadcast %130 : vector<1x32xf32> to vector<16x32xf32>
    %152 = arith.addf %150, %151 : vector<16x32xf32>
    %c0_83 = arith.constant 0 : index
    %c0_84 = arith.constant 0 : index
    %153 = vector.load %arg19[%c0_83, %c0_84] : memref<16x32xf32, #tpu.memory_space<vmem>>, vector<16x32xf32>
    tpu.vector_store %arg19[%c0_83, %c0_84], %152 {strides = array<i32>} : memref<16x32xf32, #tpu.memory_space<vmem>>, vector<16x32xf32>,
    %c1_i32 = arith.constant 1 : i32
    %154 = arith.cmpi eq, %arg1, %c1_i32 : i32
    %155 = arith.extui %154 : i1 to i32
    %c0_i32_85 = arith.constant 0 : i32
    %156 = arith.cmpi ne, %155, %c0_i32_85 : i32
    scf.if %156 {
      %c0_86 = arith.constant 0 : index
      %c0_87 = arith.constant 0 : index
      %c0_88 = arith.constant 0 : index
      %157 = vector.load %arg18[%c0_86, %c0_87, %c0_88] : memref<1x16x32xf32, #tpu.memory_space<vmem>>, vector<1x16x32xf32>
      %158 = vector.shape_cast %157 : vector<1x16x32xf32> to vector<16x32xf32>
      %159 = vector.shape_cast %152 : vector<16x32xf32> to vector<1x16x32xf32>
      tpu.vector_store %arg18[%c0_86, %c0_87, %c0_88], %159 {strides = array<i32>} : memref<1x16x32xf32, #tpu.memory_space<vmem>>, vector<1x16x32xf32>,
    } else {
    }
    return
  }
  func.func @transform_0(%arg0: i32, %arg1: i32) -> (i32, i32, i32) {
    %c0_i32 = arith.constant 0 : i32
    %c0_i32_0 = arith.constant 0 : i32
    %c0_i32_1 = arith.constant 0 : i32
    return %arg0, %c0_i32, %c0_i32_0 : i32, i32, i32
  }
  func.func @transform_1(%arg0: i32, %arg1: i32) -> (i32, i32, i32, i32) {
    %c0_i32 = arith.constant 0 : i32
    %c0_i32_0 = arith.constant 0 : i32
    %c0_i32_1 = arith.constant 0 : i32
    %c0_i32_2 = arith.constant 0 : i32
    return %arg0, %c0_i32, %c0_i32_0, %c0_i32_1 : i32, i32, i32, i32
  }
  func.func @transform_2(%arg0: i32, %arg1: i32) -> (i32, i32, i32) {
    %c0_i32 = arith.constant 0 : i32
    %c0_i32_0 = arith.constant 0 : i32
    %c0_i32_1 = arith.constant 0 : i32
    return %arg0, %c0_i32, %c0_i32_0 : i32, i32, i32
  }
  func.func @transform_3(%arg0: i32, %arg1: i32) -> (i32, i32, i32) {
    %c0_i32 = arith.constant 0 : i32
    %c0_i32_0 = arith.constant 0 : i32
    %c0_i32_1 = arith.constant 0 : i32
    return %arg0, %c0_i32, %c0_i32_0 : i32, i32, i32
  }
  func.func @transform_4(%arg0: i32, %arg1: i32) -> (i32, i32, i32, i32) {
    %c0_i32 = arith.constant 0 : i32
    %c0_i32_0 = arith.constant 0 : i32
    %c0_i32_1 = arith.constant 0 : i32
    return %arg0, %arg1, %c0_i32, %c0_i32_0 : i32, i32, i32, i32
  }
  func.func @transform_5(%arg0: i32, %arg1: i32) -> (i32, i32, i32, i32) {
    %c0_i32 = arith.constant 0 : i32
    %c0_i32_0 = arith.constant 0 : i32
    %c0_i32_1 = arith.constant 0 : i32
    return %arg0, %arg1, %c0_i32, %c0_i32_0 : i32, i32, i32, i32
  }
  func.func @transform_6(%arg0: i32, %arg1: i32) -> (i32, i32, i32, i32) {
    %c0_i32 = arith.constant 0 : i32
    %c0_i32_0 = arith.constant 0 : i32
    %c0_i32_1 = arith.constant 0 : i32
    return %arg0, %arg1, %c0_i32, %c0_i32_0 : i32, i32, i32, i32
  }
  func.func @transform_7(%arg0: i32, %arg1: i32) -> (i32, i32, i32, i32) {
    %c0_i32 = arith.constant 0 : i32
    %c0_i32_0 = arith.constant 0 : i32
    %c0_i32_1 = arith.constant 0 : i32
    return %arg0, %arg1, %c0_i32, %c0_i32_0 : i32, i32, i32, i32
  }
  func.func @transform_8(%arg0: i32, %arg1: i32) -> (i32, i32, i32, i32) {
    %c0_i32 = arith.constant 0 : i32
    %c0_i32_0 = arith.constant 0 : i32
    %c0_i32_1 = arith.constant 0 : i32
    return %arg0, %arg1, %c0_i32, %c0_i32_0 : i32, i32, i32, i32
  }
  func.func @transform_9(%arg0: i32, %arg1: i32) -> (i32, i32, i32, i32) {
    %c0_i32 = arith.constant 0 : i32
    %c0_i32_0 = arith.constant 0 : i32
    %c0_i32_1 = arith.constant 0 : i32
    return %arg0, %arg1, %c0_i32, %c0_i32_0 : i32, i32, i32, i32
  }
  func.func @transform_10(%arg0: i32, %arg1: i32) -> (i32, i32, i32, i32) {
    %c0_i32 = arith.constant 0 : i32
    %c0_i32_0 = arith.constant 0 : i32
    %c0_i32_1 = arith.constant 0 : i32
    return %arg0, %arg1, %c0_i32, %c0_i32_0 : i32, i32, i32, i32
  }
  func.func @transform_11(%arg0: i32, %arg1: i32) -> (i32, i32, i32, i32) {
    %c0_i32 = arith.constant 0 : i32
    %c0_i32_0 = arith.constant 0 : i32
    %c0_i32_1 = arith.constant 0 : i32
    return %arg0, %arg1, %c0_i32, %c0_i32_0 : i32, i32, i32, i32
  }
  func.func @transform_12(%arg0: i32, %arg1: i32) -> (i32, i32, i32, i32) {
    %c0_i32 = arith.constant 0 : i32
    %c0_i32_0 = arith.constant 0 : i32
    %c0_i32_1 = arith.constant 0 : i32
    return %arg0, %arg1, %c0_i32, %c0_i32_0 : i32, i32, i32, i32
  }
  func.func @transform_13(%arg0: i32, %arg1: i32) -> (i32, i32, i32, i32) {
    %c0_i32 = arith.constant 0 : i32
    %c0_i32_0 = arith.constant 0 : i32
    %c0_i32_1 = arith.constant 0 : i32
    return %arg0, %arg1, %c0_i32, %c0_i32_0 : i32, i32, i32, i32
  }
  func.func @transform_14(%arg0: i32, %arg1: i32) -> (i32, i32, i32, i32) {
    %c0_i32 = arith.constant 0 : i32
    %c0_i32_0 = arith.constant 0 : i32
    %c0_i32_1 = arith.constant 0 : i32
    return %arg0, %arg1, %c0_i32, %c0_i32_0 : i32, i32, i32, i32
  }
  func.func @transform_15(%arg0: i32, %arg1: i32) -> (i32, i32, i32, i32) {
    %c0_i32 = arith.constant 0 : i32
    %c0_i32_0 = arith.constant 0 : i32
    %c0_i32_1 = arith.constant 0 : i32
    return %arg0, %arg1, %c0_i32, %c0_i32_0 : i32, i32, i32, i32
  }
  func.func @transform_16(%arg0: i32, %arg1: i32) -> (i32, i32, i32) {
    %c0_i32 = arith.constant 0 : i32
    %c0_i32_0 = arith.constant 0 : i32
    %c0_i32_1 = arith.constant 0 : i32
    return %arg0, %c0_i32, %c0_i32_0 : i32, i32, i32
  }
}

</mosaic_0001>

<bundles_post_ra>
// kernel: _biencoder_forward.1
= control target key start
LH: loop header
LB: loop body
LE: loop exit
PB: predicated region body
PF: predicated region fallthrough
CT: control target
= control target key end

     0   :  { %s2841_s21 = smov 0   ;;  %s2843_s22 = smov 0   ;;  %s3154_s0 = inlined_call_operand.vmem [shape: f32[2,16,32], index: 0, kind: input, shape index: {}]   ;;  %s3155_s1 = inlined_call_operand.vmem [shape: f32[2,2,1,8], index: 1, kind: input, shape index: {}]   ;;  %s3156_s2 = inlined_call_operand.vmem [shape: f32[2,1,32], index: 2, kind: input, shape index: {}]   ;;  %s3157_s3 = inlined_call_operand.vmem [shape: f32[2,1,32], index: 3, kind: input, shape index: {}]   ;;  %s3158_s4 = inlined_call_operand.vmem [shape: bf16[2,2,32,96], index: 4, kind: input, shape index: {}]   ;;  %s3159_s5 = inlined_call_operand.vmem [shape: f32[2,2,1,96], index: 5, kind: input, shape index: {}]   ;;  %s3160_s6 = inlined_call_operand.vmem [shape: bf16[2,2,32,32], index: 6, kind: input, shape index: {}]   ;;  %s3161_s7 = inlined_call_operand.vmem [shape: f32[2,2,1,32], index: 7, kind: input, shape index: {}]   ;;  %s3162_s8 = inlined_call_operand.vmem [shape: f32[2,2,1,32], index: 8, kind: input, shape index: {}]   ;;  %s3163_s9 = inlined_call_operand.vmem [shape: f32[2,2,1,32], index: 9, kind: input, shape index: {}]   ;;  %s3164_s10 = inlined_call_operand.vmem [shape: bf16[2,2,32,64], index: 10, kind: input, shape index: {}]   ;;  %s3165_s11 = inlined_call_operand.vmem [shape: f32[2,2,1,64], index: 11, kind: input, shape index: {}]   ;;  %s3166_s12 = inlined_call_operand.vmem [shape: bf16[2,2,64,32], index: 12, kind: input, shape index: {}]   ;;  %s3167_s13 = inlined_call_operand.vmem [shape: f32[2,2,1,32], index: 13, kind: input, shape index: {}]   ;;  %s3168_s14 = inlined_call_operand.vmem [shape: f32[2,2,1,32], index: 14, kind: input, shape index: {}]   ;;  %s3169_s15 = inlined_call_operand.vmem [shape: f32[2,2,1,32], index: 15, kind: input, shape index: {}]   ;;  %s3170_s16 = inlined_call_operand.vmem [shape: f32[2,16,32], index: 16, kind: output, shape index: {}]  }
   0x1   :  { %3177 = sst [smem:[#allocation11_spill]] %s3154_s0  ;;  %s2845_s23 = smov 0  }
   0x2   :  { %3178 = sst [smem:[#allocation12_spill]] %s3155_s1  ;;  %s2847_s24 = smov 0  }
   0x3   :  { %3179 = sst [smem:[#allocation13_spill]] %s3158_s4  ;;  %s2849_s25 = smov 0  }
   0x4   :  { %3180 = sst [smem:[#allocation14_spill]] %s3160_s6 }
   0x5   :  { %3181 = sst [smem:[#allocation15_spill]] %s3161_s7 }
   0x6   :  { %3182 = sst [smem:[#allocation16_spill]] %s3162_s8 }
   0x7   :  { %3183 = sst [smem:[#allocation17_spill]] %s3163_s9 }
   0x8   :  { %3184 = sst [smem:[#allocation18_spill]] %s3164_s10 }
   0x9   :  { %3185 = sst [smem:[#allocation19_spill]] %s3165_s11 }
   0xa   :  { %3186 = sst [smem:[#allocation20_spill]] %s3166_s12 }
   0xb   :  { %3187 = sst [smem:[#allocation21_spill]] %s3167_s13 }
   0xc   :  { %3188 = sst [smem:[#allocation22_spill]] %s3168_s14 }
   0xd   :  { %3189 = sst [smem:[#allocation23_spill]] %s3169_s15 }
   0xe   :  { %3190 = sst [smem:[#allocation24_spill]] %s3170_s16 }
   0xf LB: > { %3191 = sst [smem:[#allocation3_spill]] %s2731_s21  ;;  %s35_s26 = sadd.s32 1, %s2739_s23  ;;  %s2747_s25 = sphi %s2849_s25, %s26_s25   ;;  %s2743_s24 = sphi %s2847_s24, %s3235_s24   ;;  %s2739_s23 = sphi %s2845_s23, %s3234_s23   ;;  %s2735_s22 = sphi %s2843_s22, %s3233_s22   ;;  %s2731_s21 = sphi %s2841_s21, %s3232_s21  }
  0x10   : > { %3192 = sst [smem:[#allocation4_spill]] %s2739_s23  ;;  %s38_s27 = sadd.s32 1, %s2743_s24 }
  0x11   : > { %3193 = sst [smem:[#allocation5_spill]] %s2743_s24  ;;  %p36_p0 = scmp.ge.s32.totalorder %s35_s26, 2 }
  0x12   : > { %3194 = sst [smem:[#allocation6_spill]] %s2747_s25  ;;  %p2438_p1 = scmp.ge.s32.totalorder %s2747_s25, 1 }
  0x13   : > { %p675_p2 = scmp.lt.s32.totalorder %s2747_s25, 5  ;;  %s3237_s26 = smov (%p36_p0, %s35_s26), 0 }
  0x14   : > { %3195 = sst [smem:[#allocation7_spill]] %s3237_s26  ;;  %s3239_s27 = smov (!%p36_p0, %s38_s27), %s2743_s24 }
  0x15   : > { %p676_p3 = pnand %p2438_p1, %p675_p2  ;;  %p40_p4 = scmp.ge.s32.totalorder %s3239_s27, 2 }
  0x17   : > { %s3241_s27 = smov (%p40_p4, %s3239_s27), 0  ;;  %679 = sbr.rel (%p676_p3) target bundleno = 3171 (0xc63), region = 84 }
  0x18   : > { %3196 = sst [smem:[#allocation8_spill]] %s3241_s27 }
  0x1c   : > { %p827_p5 = scmp.lt.s32.totalorder %s2735_s22, 1  ;;  %p844_p6 = scmp.lt.s32.totalorder %s2731_s21, 1 }
  0x1d   : > { %s3197_s18 = sld [smem:[#allocation11_spill]] }
  0x1e   : > { %s3243_s22 = smov (!%p827_p5, %s2735_s22), 1  ;;  %s3198_s1 = sld [smem:[#allocation12_spill]] }
  0x1f   : > { %s845_s28 = scalar_select %p844_p6, %s2731_s21, 1 }
  0x20   : > { %s2507_s29 = sshll.u32 %s3243_s22, 4  ;;  %s2441_s30 = sshll.u32 %s3243_s22, 1 }
  0x21   : > { %s2442_s21 = sshll.u32 %s845_s28, 2  ;;  %s2443_s14 = sshll.u32 %s3243_s22, 3 }
  0x22   : > { %s848_s13 = sadd.s32 %s2443_s14, %s2442_s21  ;;  %s2896_s11 = sadd.s32 %s2441_s30, %s845_s28 }
  0x23   : > { %s831_s19 = scalar_lea.vmem %s3197_s18, %s2507_s29  ;;  %s2444_s27 = sshll.u32 %s848_s13, 2 }
  0x24   : > { %s2885_s26 = scalar_lea.vmem %s3198_s1, %s2441_s30  ;;  %s3200_s4 = sld [smem:[#allocation13_spill]] }
  0x25   : > { %3199 = sst [smem:[#allocation9_spill]] %s2885_s26  ;;  %s2456_s26 = sshll.u32 %s845_s28, 3 }
  0x26   : > { %s3201_s6 = sld [smem:[#allocation14_spill]]  ;;  %s910_s18 = sadd.s32 %s2507_s29, %s2456_s26 }
  0x27   : > { %s3206_s10 = sld [smem:[#allocation18_spill]]  ;;  %s2458_s13 = sshll.u32 %s910_s18, 2 }
  0x28   : > { %s3208_s7 = sld [smem:[#allocation21_spill]] }
  0x29   : > { %s3209_s23 = sld [smem:[#allocation22_spill]] }
  0x2a   : > { %s2905_s17 = scalar_lea.vmem %s3200_s4, %s2444_s27  ;;  %s3210_s15 = sld [smem:[#allocation20_spill]] }
  0x2b   : > { %s3211_s14 = sld [smem:[#allocation23_spill]] }
  0x2c   : > { %s2910_s30 = scalar_lea.vmem %s3201_s6, %s2444_s27  ;;  %s3212_s21 = sld [smem:[#allocation24_spill]] }
  0x2d   : > { %3202 = sst [smem:[#allocation10_spill]] %s2910_s30  ;;  %s2927_s4 = scalar_lea.vmem %s3206_s10, %s2444_s27 }
  0x2e   : > { %s919_s25 = scalar_lea.vmem %s3208_s7, %s2896_s11  ;;  %s3213_s7 = sld [smem:[#allocation3_spill]] }
  0x2f   : > { %s926_s24 = scalar_lea.vmem %s3209_s23, %s2896_s11 }
  0x30   : > { %s2944_s27 = scalar_lea.vmem %s3210_s15, %s2458_s13 }
  0x31   : > { %s933_s6 = scalar_lea.vmem %s3211_s14, %s2896_s11 }
  0x32   : > { %s2953_s30 = scalar_lea.vmem %s3212_s21, %s2507_s29 }
  0x34   : > { %p2464_p7 = scmp.ne.s32.totalorder %s3213_s7, 0 }
  0x35   : > { %s3214_s9 = scalar_lea.vmem (!%p2464_p7), %s3156_s2, %s3243_s22  ;;  %s3215_s29 = scalar_lea.vmem (!%p2464_p7), %s3157_s3, %s3243_s22 }
  0x36   : > { %943 = sbr.rel (%p2464_p7) target bundleno = 373 (0x175), region = 88 }
  0x3b   : > { %v944_v0 = vld [vmem:[%s831_s19] sm:$0xff]  ;;  %vm948_vm0 = vcmask 261120   ;;  %v945_v1 = vld [vmem:[%s831_s19 + $0x8] sm:$0xff] }
  0x3c   : > { %v949_v2 = vsel %vm948_vm0, %v944_v0, 0.0  ;;  %v952_v3 = vsel %vm948_vm0, %v945_v1, 0.0  ;;  %v2465_v21 = vld [vmem:[%s3214_s9] ss:$0 sm:$0xff] }
  0x3d   : > { %950 = vadd.xlane.f32.xlu0 %v949_v2  ;;  %v2466_v23 = vld [vmem:[%s3215_s29] ss:$0 sm:$0xff] }
  0x41   : > { %953 = vadd.xlane.f32.xlu0 %v952_v3 }
  0xc6   : > { %v951_v4 = vpop.xlane.xlu0 %950 }
  0xc7   : > { %v956_v5 = vmul.f32 0.03125, %v951_v4 }
  0xc9   : > { %v958_v6 = vsub.f32 %v944_v0, %v956_v5 }
  0xca   : > { %v954_v7 = vpop.xlane.xlu0 %953 }
  0xcb   : > { %v957_v8 = vmul.f32 0.03125, %v954_v7  ;;  %v960_v9 = vmul.f32 %v958_v6, %v958_v6 }
  0xcd   : > { %v959_v10 = vsub.f32 %v945_v1, %v957_v8  ;;  %v962_v11 = vsel %vm948_vm0, %v960_v9, 0.0 }
  0xce   : > { %963 = vadd.xlane.f32.xlu1 %v962_v11 }
  0xcf   : > { %v961_v12 = vmul.f32 %v959_v10, %v959_v10 }
  0xd1   : > { %v965_v13 = vsel %vm948_vm0, %v961_v12, 0.0 }
  0xd2   : > { %966 = vadd.xlane.f32.xlu1 %v965_v13 }
 0x157   : > { %v964_v14 = vpop.xlane.xlu1 %963 }
 0x158   : > { %v968_v15 = vmul.f32 0.03125, %v964_v14 }
 0x15a   : > { %v970_v16 = vadd.f32 1e-12, %v968_v15 }
 0x15b   : > { %v967_v17 = vpop.xlane.xlu1 %966 }
 0x15c   : > { %2667 = vrsqrt.f32 %v970_v16  ;;  %v969_v18 = vmul.f32 0.03125, %v967_v17 }
 0x15e   : > { %v971_v19 = vadd.f32 1e-12, %v969_v18 }
 0x160   : > { %2669 = vrsqrt.f32 %v971_v19 }
 0x169   : > { %v2668_v20 = vpop.eup %2667 }
 0x16a   : > { %v974_v22 = vmul.f32 %v2668_v20, %v958_v6 }
 0x16c   : > { %v982_v24 = vmul.f32 %v2465_v21, %v974_v22 }
 0x16d   : > { %v2670_v25 = vpop.eup %2669 }
 0x16e   : > { %v990_v26 = vadd.f32 %v2466_v23, %v982_v24  ;;  %v975_v27 = vmul.f32 %v2670_v25, %v959_v10 }
 0x170   : > { %992 = vst.msk [vmem:[#allocation2] sm:$0xff] %vm948_vm0, %v990_v26  ;;  %v983_v28 = vmul.f32 %v2465_v21, %v975_v27 }
 0x172   : > { %v991_v29 = vadd.f32 %v2466_v23, %v983_v28 }
 0x174   : > { %993 = vst.msk [vmem:[#allocation2 + $0x8] sm:$0xff] %vm948_vm0, %v991_v29 }
 0x175 PF: > { %v2671_v30 = vld [vmem:[%s2905_s17 + $0x8] sm:$0xff]   ;;  %v2749_v31 = vmov 0.0   ;;  %v2672_v32 = vld [vmem:[%s2905_s17] sm:$0xff]   ;;  %vm2750_vm1 = vmmov 0   ;;  %vm1022_vm2 = vcmask 261120   ;;  %s3216_s0 = scalar_lea.vmem %s3159_s5, %s2896_s11  ;;  %s2751_s17 = smov 96  }
 0x176   : > { %2540 = vmatprep.subr.bf16.mxu0 %v2749_v31  ;;  %2548 = vmatprep.subr.mxu1 %v2749_v31  ;;  %v2467_v36 = vld [vmem:[%s3216_s0] ss:$0 sm:$0xff]  ;;  %s3217_s18 = sld [smem:[#allocation9_spill]]  ;;  %vm1074_vm3 = vcmask 130048   ;;  %vm1242_vm4 = vcmask 64512   ;;  %s2752_s20 = smov 64  }
 0x177   : > { %2541 = vmatpush3.bf16.msra.mxu0 %v2671_v30  ;;  %2544 = vmatprep.mubr.msk.bf16.mxu0 %vm2750_vm1, %v2749_v31  ;;  %v2978_v33 = vld [vmem:[#allocation2] sm:$0xff]  ;;  %s2753_s13 = smov 80   ;;  %s2754_s23 = smov 112   ;;  %vm2035_vm5 = vcmask 523264  }
 0x178   : > { %2542 = vmatprep.subr.bf16.mxu0 %v2749_v31  ;;  %2550 = vmatprep.mubr.msk.f32.mxu1 %vm2750_vm1, %v2749_v31  ;;  %s2755_s15 = smov 48   ;;  %s3218_s16 = sld [smem:[#allocation10_spill]] }
 0x179   : > { %s3219_s26 = sld [smem:[#allocation15_spill]] }
 0x17a   : > { %s3221_s8 = sld [smem:[#allocation16_spill]] }
 0x17b   : > { %v2980_v34 = vld [vmem:[#allocation2 + $0x8] sm:$0xff]  ;;  %2543 = vmatpush3.bf16.msra.mxu0 %v2672_v32  ;;  %s3223_s12 = sld [smem:[#allocation17_spill]] }
 0x17c   : > { %v998_v35 = vpack.c.bf16 %v2980_v34, %v2978_v33  ;;  %2573 = vmatprep.subr.mxu0 %v2749_v31  ;;  %v3015_v46 = vld [vmem:[%s3217_s18] ss:$0 sm:$0xff]  ;;  %v3019_v51 = vld [vmem:[%s3217_s18 + $0x1] ss:$0 sm:$0xff]  ;;  %s3225_s0 = sld [smem:[#allocation19_spill]] }
 0x17d   : > { %s3230_s28 = sld [smem:[#allocation3_spill]] }
 0x17e   : > { %2545 = vmatmul.mubr.msk.bf16.vlgmr.msra.gmra.mxu0 %vm1022_vm2, %v998_v35 }
 0x17f   : > { %2575 = vmatprep.mubr.msk.f32.mxu0 %vm2750_vm1, %v2749_v31  ;;  %s3220_s21 = scalar_lea.vmem %s3219_s26, %s2896_s11 }
 0x181   : > { %s3224_s29 = scalar_lea.vmem %s3223_s12, %s2896_s11 }
 0x183   : > { %p2504_p8 = scmp.ne.s32.totalorder %s3230_s28, 1 }
 0x23e   : > { %v1060_v37 = vpop.f32.mrf.mxu0 }
 0x23f   : > { %v2996_v38 = vadd.f32 %v2467_v36, %v1060_v37 }
 0x240   : > { %v2546_v39 = vpop.f32.mrf.mxu0 }
 0x241   : > { %1072 = vrot.lane.b32.xlu0 %v2996_v38, %s2751_s17 }
 0x242   : > { %v1063_v40 = vpop.f32.mrf.mxu0 }
 0x243   : > { %v2999_v41 = vadd.f32 %v2467_v36, %v1063_v40 }
 0x244   : > { %v2547_v42 = vpop.f32.mrf.mxu0 }
 0x245   : > { %1150 = vrot.lane.b32.xlu0 %v2999_v41, %s2751_s17  ;;  %s3226_s17 = scalar_lea.vmem %s3225_s0, %s2896_s11 }
 0x2b3   : > { %v1073_v43 = vpop.permute.xlu0 %1072 }
 0x2b4   : > { %2549 = vmatpush3.xpose.msk.msra.mxu1 %vm1074_vm3, %v1073_v43 }
 0x2b5   : > { %2553 = vmatprep.subr.mxu1 %v2749_v31 }
 0x2b7   : > { %2551 = vmatmul.mubr.msk.f32.vlgmr.msra.gmra.mxu1 %vm1074_vm3, %v2996_v38  ;;  %v1151_v44 = vpop.permute.xlu0 %1150 }
 0x2b8   : > { %2554 = vmatpush3.xpose.msk.msra.mxu1 %vm1074_vm3, %v1151_v44  ;;  %2555 = vmatprep.mubr.msk.f32.mxu1 %vm2750_vm1, %v2749_v31 }
 0x2b9   : > { %2558 = vmatprep.subr.mxu1 %v2749_v31 }
 0x2bb   : > { %2556 = vmatmul.mubr.msk.f32.vlgmr.msra.gmra.mxu1 %vm1074_vm3, %v2999_v41 }
 0x2bc   : > { %2560 = vmatprep.mubr.msk.f32.mxu1 %vm2750_vm1, %v2749_v31 }
 0x377   : > { %v1145_v45 = vpop.f32.mrf.mxu1 }
 0x378   : > { %v1226_v47 = vmul.f32 0.25, %v1145_v45 }
 0x379   : > { %v2552_v48 = vpop.f32.mrf.mxu1 }
 0x37a   : > { %v1240_v49 = vadd.f32 %v3015_v46, %v1226_v47  ;;  %v2673_v47 = vld [vmem:[%s3218_s16] sm:$0xff]  }
 0x37b   : > { %v1222_v50 = vpop.f32.mrf.mxu1 }
 0x37c   : > { %v1227_v52 = vmul.f32 0.25, %v1222_v50  ;;  %v1243_v53 = vsel %vm1242_vm4, %v1240_v49, -inf }
 0x37d   : > { %1244 = vmax.xlane.f32.xlu1 %v1243_v53  ;;  %v2557_v54 = vpop.f32.mrf.mxu1 }
 0x37e   : > { %v1241_v55 = vadd.f32 %v3019_v51, %v1227_v52  ;;  %v2674_v52 = vld [vmem:[%s3218_s16 + $0x8] sm:$0xff]  }
 0x380   : > { %v1246_v56 = vsel %vm1242_vm4, %v1241_v55, -inf }
 0x381   : > { %1247 = vmax.xlane.f32.xlu1 %v1246_v56 }
 0x392   : > { %1265 = vrot.lane.b32.xlu1 %v2996_v38, %s2752_s20 }
 0x396   : > { %1341 = vrot.lane.b32.xlu1 %v2999_v41, %s2752_s20 }
 0x39a   : > { %1420 = vrot.lane.b32.xlu1 %v2996_v38, %s2753_s13 }
 0x39e   : > { %1498 = vrot.lane.b32.xlu1 %v2999_v41, %s2753_s13 }
 0x406   : > { %v1245_v57 = vpop.xlane.xlu1 %1244 }
 0x407   : > { %v1249_v58 = vsub.f32 %v1240_v49, %v1245_v57 }
 0x409   : > { %v1251_v59 = vmul.f32 1.442695, %v1249_v58 }
 0x40a   : > { %v1248_v60 = vpop.xlane.xlu1 %1247 }
 0x40b   : > { %2681 = vpow2.f32 %v1251_v59  ;;  %v1250_v61 = vsub.f32 %v1241_v55, %v1248_v60 }
 0x40d   : > { %v1253_v62 = vmul.f32 1.442695, %v1250_v61 }
 0x40e   : > { %v1266_v63 = vpop.permute.xlu1 %1265 }
 0x40f   : > { %2683 = vpow2.f32 %v1253_v62  ;;  %2559 = vmatpush3.msra.mxu1 %v1266_v63  ;;  %v2489_v63 = vld [vmem:[%s3220_s21] ss:$0 sm:$0xff] }
 0x410   : > { %2563 = vmatprep.subr.mxu1 %v2749_v31 }
 0x412   : > { %v1342_v0 = vpop.permute.xlu1 %1341 }
 0x416   : > { %v1421_v1 = vpop.permute.xlu1 %1420 }
 0x418   : > { %v2682_v2 = vpop.eup %2681 }
 0x419   : > { %v1255_v3 = vsel %vm1242_vm4, %v2682_v2, 0.0 }
 0x41a   : > { %1256 = vadd.xlane.f32.xlu0 %v1255_v3  ;;  %v1499_v4 = vpop.permute.xlu1 %1498 }
 0x41b   : > { %2574 = vmatpush3.xpose.msk.msra.mxu0 %vm1074_vm3, %v1499_v4 }
 0x41c   : > { %v2684_v5 = vpop.eup %2683  ;;  %2583 = vmatprep.subr.mxu0 %v2749_v31 }
 0x41d   : > { %v1258_v6 = vsel %vm1242_vm4, %v2684_v5, 0.0 }
 0x41e   : > { %1259 = vadd.xlane.f32.xlu1 %v1258_v6 }
 0x42f   : > { %1496 = vrot.lane.b32.xlu1 %v2999_v41, %s2754_s23 }
 0x430   : > { %1418 = vrot.lane.b32.xlu0 %v2996_v38, %s2754_s23 }
 0x4a3   : > { %v1257_v7 = vpop.xlane.xlu0 %1256 }
 0x4a4   : > { %2685 = vrcp.f32 %v1257_v7 }
 0x4a7   : > { %v1260_v8 = vpop.xlane.xlu1 %1259  ;;  %v1419_v14 = vpop.permute.xlu0 %1418 }
 0x4a8   : > { %2687 = vrcp.f32 %v1260_v8 }
 0x4ab   : > { %v1497_v9 = vpop.permute.xlu1 %1496 }
 0x4ac   : > { %2576 = vmatmul.mubr.msk.f32.vlgmr.msra.gmra.mxu0 %vm1074_vm3, %v1497_v9 }
 0x4ad   : > { %2585 = vmatprep.mubr.msk.f32.mxu0 %vm2750_vm1, %v2749_v31 }
 0x4b1   : > { %v2686_v10 = vpop.eup %2685 }
 0x4b2   : > { %v1263_v11 = vmul.f32 %v2686_v10, %v2682_v2 }
 0x4b4   : > { %2561 = vmatmul.mubr.msk.f32.vlgmr.msra.gmra.mxu1 %vm1242_vm4, %v1263_v11 }
 0x4b5   : > { %v2688_v12 = vpop.eup %2687  ;;  %2564 = vmatpush3.msra.mxu1 %v1342_v0  ;;  %2565 = vmatprep.mubr.msk.f32.mxu1 %vm2750_vm1, %v2749_v31 }
 0x4b6   : > { %2568 = vmatprep.subr.mxu1 %v2749_v31  ;;  %v1264_v13 = vmul.f32 %v2688_v12, %v2684_v5 }
 0x4b8   : > { %2566 = vmatmul.mubr.msk.f32.vlgmr.msra.gmra.mxu1 %vm1242_vm4, %v1264_v13 }
 0x4b9   : > { %2569 = vmatpush3.xpose.msk.msra.mxu1 %vm1074_vm3, %v1421_v1  ;;  %2570 = vmatprep.mubr.msk.f32.mxu1 %vm2750_vm1, %v2749_v31 }
 0x4ba   : > { %2578 = vmatprep.subr.mxu1 %v2749_v31 }
 0x4bc   : > { %2571 = vmatmul.mubr.msk.f32.vlgmr.msra.gmra.mxu1 %vm1074_vm3, %v1419_v14 }
 0x4bd   : > { %2580 = vmatprep.mubr.msk.f32.mxu1 %vm2750_vm1, %v2749_v31 }
 0x56c   : > { %v1570_v15 = vpop.f32.mrf.mxu0 }
 0x56d   : > { %v1575_v16 = vmul.f32 0.25, %v1570_v15 }
 0x56e   : > { %v2577_v17 = vpop.f32.mrf.mxu0 }
 0x56f   : > { %v1577_v18 = vadd.f32 %v3019_v51, %v1575_v16 }
 0x571   : > { %v1581_v19 = vsel %vm1242_vm4, %v1577_v18, -inf }
 0x572   : > { %1582 = vmax.xlane.f32.xlu0 %v1581_v19 }
 0x574   : > { %v1337_v20 = vpop.f32.mrf.mxu1 }
 0x576   : > { %v2562_v21 = vpop.f32.mrf.mxu1 }
 0x578   : > { %v1413_v22 = vpop.f32.mrf.mxu1 }
 0x579   : > { %v1417_v23 = vpack.c.bf16 %v1413_v22, %v1337_v20  ;;  %v2676_v20 = vld [vmem:[%s2927_s4] sm:$0xff]  }
 0x57a   : > { %v2567_v24 = vpop.f32.mrf.mxu1 }
 0x57c   : > { %v1492_v25 = vpop.f32.mrf.mxu1 }
 0x57d   : > { %v1574_v26 = vmul.f32 0.25, %v1492_v25 }
 0x57e   : > { %v2572_v27 = vpop.f32.mrf.mxu1 }
 0x57f   : > { %v1576_v28 = vadd.f32 %v3015_v46, %v1574_v26 }
 0x581   : > { %v1578_v29 = vsel %vm1242_vm4, %v1576_v28, -inf }
 0x582   : > { %1579 = vmax.xlane.f32.xlu1 %v1578_v29 }
 0x588   : > { %1676 = vrot.lane.b32.xlu0 %v2999_v41, %s2755_s15 }
 0x5fb   : > { %v1583_v30 = vpop.xlane.xlu0 %1582 }
 0x5fc   : > { %v1585_v32 = vsub.f32 %v1577_v18, %v1583_v30 }
 0x5fe   : > { %v1588_v35 = vmul.f32 1.442695, %v1585_v32 }
 0x5ff   : > { %v1677_v36 = vpop.permute.xlu0 %1676 }
 0x600   : > { %2689 = vpow2.f32 %v1588_v35  ;;  %2584 = vmatpush3.msra.mxu0 %v1677_v36  ;;  %v2491_v36 = vld [vmem:[%s3224_s29] ss:$0 sm:$0xff] }
 0x601   : > { %2594 = vmatprep.subr.bf16.mxu0 %v2749_v31 }
 0x60b   : > { %v1580_v37 = vpop.xlane.xlu1 %1579 }
 0x60c   : > { %v1584_v39 = vsub.f32 %v1576_v28, %v1580_v37 }
 0x60d   : > { %v2690_v40 = vpop.eup %2689 }
 0x60e   : > { %v1586_v42 = vmul.f32 1.442695, %v1584_v39  ;;  %v1593_v43 = vsel %vm1242_vm4, %v2690_v40, 0.0 }
 0x60f   : > { %1594 = vadd.xlane.f32.xlu1 %v1593_v43  ;;  %v2677_v43 = vld [vmem:[%s2944_s27 + $0x18] sm:$0xff]  }
 0x610   : > { %2691 = vpow2.f32 %v1586_v42 }
 0x61d   : > { %v2692_v44 = vpop.eup %2691 }
 0x61e   : > { %v1590_v41 = vsel %vm1242_vm4, %v2692_v44, 0.0 }
 0x61f   : > { %1591 = vadd.xlane.f32.xlu1 %v1590_v41  ;;  %v2679_v41 = vld [vmem:[%s2944_s27 + $0x8] sm:$0xff]  }
 0x630   : > { %1600 = vrot.lane.b32.xlu1 %v2996_v38, %s2755_s15 }
 0x698   : > { %v1595_v45 = vpop.xlane.xlu1 %1594 }
 0x699   : > { %2693 = vrcp.f32 %v1595_v45  ;;  %v2680_v45 = vld [vmem:[%s2944_s27] sm:$0xff]  }
 0x6a6   : > { %v2694_v46 = vpop.eup %2693 }
 0x6a7   : > { %v1599_v48 = vmul.f32 %v2694_v46, %v2690_v40  ;;  %v2492_v46 = vld [vmem:[%s3226_s17] ss:$0 sm:$0xff] }
 0x6a8   : > { %v1592_v49 = vpop.xlane.xlu1 %1591 }
 0x6a9   : > { %2695 = vrcp.f32 %v1592_v49  ;;  %2586 = vmatmul.mubr.msk.f32.vlgmr.msra.gmra.mxu0 %vm1242_vm4, %v1599_v48 }
 0x6aa   : > { %2595 = vmatpush3.bf16.msra.mxu0 %v2673_v47  ;;  %2596 = vmatprep.mubr.msk.bf16.mxu0 %vm2750_vm1, %v2749_v31 }
 0x6ab   : > { %2608 = vmatprep.subr.bf16.mxu0 %v2749_v31 }
 0x6ac   : > { %v1601_v50 = vpop.permute.xlu1 %1600 }
 0x6ad   : > { %2579 = vmatpush3.msra.mxu1 %v1601_v50  ;;  %2597 = vmatmul.mubr.msk.bf16.vlgmr.msra.gmra.mxu0 %vm1074_vm3, %v1417_v23 }
 0x6ae   : > { %2588 = vmatprep.subr.bf16.mxu1 %v2749_v31  ;;  %2616 = vmatprep.mubr.msk.bf16.mxu0 %vm2750_vm1, %v2749_v31 }
 0x6af   : > { %2609 = vmatpush3.bf16.msra.mxu0 %v2677_v43 }
 0x6b0   : > { %2610 = vmatprep.subr.bf16.mxu0 %v2749_v31 }
 0x6b6   : > { %v2696_v38 = vpop.eup %2695 }
 0x6b7   : > { %v1598_v51 = vmul.f32 %v2696_v38, %v2692_v44  ;;  %v2678_v44 = vld [vmem:[%s2944_s27 + $0x10] sm:$0xff]  }
 0x6b8   : > { %2611 = vmatpush3.bf16.msra.mxu0 %v2678_v44 }
 0x6b9   : > { %2581 = vmatmul.mubr.msk.f32.vlgmr.msra.gmra.mxu1 %vm1242_vm4, %v1598_v51  ;;  %2612 = vmatprep.subr.bf16.mxu0 %v2749_v31 }
 0x6ba   : > { %2590 = vmatprep.mubr.msk.bf16.mxu1 %vm2750_vm1, %v2749_v31  ;;  %2589 = vmatpush3.bf16.msra.mxu1 %v2674_v52 }
 0x6bb   : > { %2600 = vmatprep.subr.bf16.mxu1 %v2749_v31 }
 0x6bc   : > { %2613 = vmatpush3.bf16.msra.mxu0 %v2679_v41 }
 0x6bd   : > { %2614 = vmatprep.subr.bf16.mxu0 %v2749_v31 }
 0x6c0   : > { %2615 = vmatpush3.bf16.msra.mxu0 %v2680_v45 }
 0x769   : > { %v1748_v53 = vpop.f32.mrf.mxu0 }
 0x76b   : > { %v2587_v54 = vpop.f32.mrf.mxu0 }
 0x76d   : > { %v1846_v55 = vpop.f32.mrf.mxu0 }
 0x76f   : > { %v2598_v56 = vpop.f32.mrf.mxu0 }
 0x771   : > { %v1849_v57 = vpop.f32.mrf.mxu0 }
 0x773   : > { %v2599_v58 = vpop.f32.mrf.mxu0 }
 0x779   : > { %v1672_v59 = vpop.f32.mrf.mxu1 }
 0x77a   : > { %v1752_v60 = vpack.c.bf16 %v1748_v53, %v1672_v59 }
 0x77b   : > { %v2582_v61 = vpop.f32.mrf.mxu1 }
 0x77c   : > { %2591 = vmatmul.mubr.msk.bf16.vlgmr.msra.gmra.mxu1 %vm1074_vm3, %v1752_v60 }
 0x77d   : > { %2604 = vmatprep.mubr.msk.bf16.mxu1 %vm2750_vm1, %v2749_v31 }
 0x83c   : > { %v1796_v62 = vpop.f32.mrf.mxu1 }
 0x83d   : > { %v1847_v0 = vadd.f32 %v1846_v55, %v1796_v62 }
 0x83e   : > { %v2592_v1 = vpop.f32.mrf.mxu1 }
 0x83f   : > { %v1860_v2 = vadd.f32 %v2489_v63, %v1847_v0 }
 0x840   : > { %v1799_v3 = vpop.f32.mrf.mxu1 }
 0x841   : > { %v1850_v4 = vadd.f32 %v1849_v57, %v1799_v3  ;;  %v1862_v5 = vadd.f32 %v1860_v2, %v2978_v33 }
 0x842   : > { %v2593_v6 = vpop.f32.mrf.mxu1 }
 0x843   : > { %v1861_v7 = vadd.f32 %v2489_v63, %v1850_v4  ;;  %v1866_v8 = vsel %vm1022_vm2, %v1862_v5, 0.0  ;;  %v2496_v6 = vld [vmem:[%s919_s25] ss:$0 sm:$0xff] }
 0x844   : > { %1867 = vadd.xlane.f32.xlu1 %v1866_v8 }
 0x845   : > { %v1863_v9 = vadd.f32 %v1861_v7, %v2980_v34  ;;  %v2675_v34 = vld [vmem:[%s2927_s4 + $0x8] sm:$0xff]   ;;  %s3222_s4 = scalar_lea.vmem %s3221_s8, %s2896_s11 }
 0x846   : > { %2601 = vmatpush3.bf16.msra.mxu1 %v2675_v34  ;;  %v2490_v29 = vld [vmem:[%s3222_s4] ss:$0 sm:$0xff] }
 0x847   : > { %v1869_v10 = vsel %vm1022_vm2, %v1863_v9, 0.0  ;;  %2602 = vmatprep.subr.bf16.mxu1 %v2749_v31 }
 0x848   : > { %1870 = vadd.xlane.f32.xlu0 %v1869_v10 }
 0x84a   : > { %2603 = vmatpush3.bf16.msra.mxu1 %v2676_v20 }
 0x8cd   : > { %v1868_v11 = vpop.xlane.xlu1 %1867 }
 0x8ce   : > { %v1873_v12 = vmul.f32 0.03125, %v1868_v11 }
 0x8d0   : > { %v1875_v13 = vsub.f32 %v1862_v5, %v1873_v12 }
 0x8d1   : > { %v1871_v14 = vpop.xlane.xlu0 %1870 }
 0x8d2   : > { %v1874_v15 = vmul.f32 0.03125, %v1871_v14  ;;  %v1877_v16 = vmul.f32 %v1875_v13, %v1875_v13 }
 0x8d4   : > { %v1876_v17 = vsub.f32 %v1863_v9, %v1874_v15  ;;  %v1879_v33 = vsel %vm1022_vm2, %v1877_v16, 0.0 }
 0x8d5   : > { %1880 = vadd.xlane.f32.xlu1 %v1879_v33 }
 0x8d6   : > { %v1878_v18 = vmul.f32 %v1876_v17, %v1876_v17 }
 0x8d8   : > { %v1882_v19 = vsel %vm1022_vm2, %v1878_v18, 0.0 }
 0x8d9   : > { %1883 = vadd.xlane.f32.xlu0 %v1882_v19 }
 0x95e   : > { %v1881_v21 = vpop.xlane.xlu1 %1880 }
 0x95f   : > { %v1885_v22 = vmul.f32 0.03125, %v1881_v21 }
 0x961   : > { %v1887_v23 = vadd.f32 1e-12, %v1885_v22 }
 0x962   : > { %v1884_v24 = vpop.xlane.xlu0 %1883 }
 0x963   : > { %2697 = vrsqrt.f32 %v1887_v23  ;;  %v1886_v25 = vmul.f32 0.03125, %v1884_v24 }
 0x965   : > { %v1888_v26 = vadd.f32 1e-12, %v1886_v25 }
 0x967   : > { %2699 = vrsqrt.f32 %v1888_v26 }
 0x970   : > { %v2698_v27 = vpop.eup %2697 }
 0x971   : > { %v1891_v28 = vmul.f32 %v2698_v27, %v1875_v13 }
 0x973   : > { %v1899_v35 = vmul.f32 %v2490_v29, %v1891_v28 }
 0x974   : > { %v2700_v30 = vpop.eup %2699 }
 0x975   : > { %v1892_v32 = vmul.f32 %v2700_v30, %v1876_v17  ;;  %v1907_v39 = vadd.f32 %v2491_v36, %v1899_v35  ;;  %v2502_v35 = vld [vmem:[%s926_s24] ss:$0 sm:$0xff] }
 0x977   : > { %v1900_v37 = vmul.f32 %v2490_v29, %v1892_v32 }
 0x979   : > { %v1908_v40 = vadd.f32 %v2491_v36, %v1900_v37  ;;  %v2503_v37 = vld [vmem:[%s933_s6] ss:$0 sm:$0xff] }
 0x97b   : > { %v1909_v42 = vpack.c.bf16 %v1908_v40, %v1907_v39 }
 0x97d   : > { %2605 = vmatmul.mubr.msk.bf16.vlgmr.msra.gmra.mxu1 %vm1022_vm2, %v1909_v42 }
 0xa3d   : > { %v1970_v47 = vpop.f32.mrf.mxu1 }
 0xa3e   : > { %v1971_v48 = vadd.f32 %v2492_v46, %v1970_v47 }
 0xa3f   : > { %v2606_v49 = vpop.f32.mrf.mxu1 }
 0xa40   : > { %v1977_v50 = vmul.f32 %v1971_v48, %v1971_v48 }
 0xa41   : > { %v1973_v38 = vpop.f32.mrf.mxu1 }
 0xa42   : > { %v1979_v51 = vmul.f32 %v1977_v50, %v1971_v48  ;;  %v1974_v52 = vadd.f32 %v2492_v46, %v1973_v38 }
 0xa43   : > { %v2607_v53 = vpop.f32.mrf.mxu1 }
 0xa44   : > { %v1981_v54 = vmul.f32 0.044715, %v1979_v51  ;;  %v1978_v55 = vmul.f32 %v1974_v52, %v1974_v52 }
 0xa46   : > { %v1983_v56 = vadd.f32 %v1981_v54, %v1971_v48  ;;  %v1980_v57 = vmul.f32 %v1978_v55, %v1974_v52 }
 0xa48   : > { %v1985_v31 = vmul.f32 0.7978846, %v1983_v56  ;;  %v1982_v58 = vmul.f32 0.044715, %v1980_v57 }
 0xa4a   : > { %2701 = vtanh.f32 %v1985_v31  ;;  %v1984_v59 = vadd.f32 %v1982_v58, %v1974_v52 }
 0xa4c   : > { %v1986_v60 = vmul.f32 0.7978846, %v1984_v59 }
 0xa4e   : > { %2703 = vtanh.f32 %v1986_v60 }
 0xa57   : > { %v2702_v61 = vpop.eup %2701 }
 0xa58   : > { %v1989_v62 = vadd.f32 1.0, %v2702_v61 }
 0xa5a   : > { %v1991_v0 = vmul.f32 0.5, %v1989_v62 }
 0xa5b   : > { %v2704_v63 = vpop.eup %2703 }
 0xa5c   : > { %v1990_v1 = vadd.f32 1.0, %v2704_v63  ;;  %v1993_v3 = vmul.f32 %v1991_v0, %v1971_v48 }
 0xa5e   : > { %v1992_v2 = vmul.f32 0.5, %v1990_v1 }
 0xa60   : > { %v1994_v4 = vmul.f32 %v1992_v2, %v1974_v52 }
 0xa62   : > { %v1995_v5 = vpack.c.bf16 %v1994_v4, %v1993_v3 }
 0xa64   : > { %2617 = vmatmul.mubr.msk.bf16.vlgmr.msra.gmra.mxu0 %vm2035_vm5, %v1995_v5 }
 0xb24   : > { %v2073_v7 = vpop.f32.mrf.mxu0 }
 0xb25   : > { %v2074_v8 = vadd.f32 %v2496_v6, %v2073_v7 }
 0xb26   : > { %v2618_v9 = vpop.f32.mrf.mxu0 }
 0xb27   : > { %v2080_v10 = vadd.f32 %v2074_v8, %v1907_v39 }
 0xb28   : > { %v2076_v11 = vpop.f32.mrf.mxu0 }
 0xb29   : > { %v2077_v12 = vadd.f32 %v2496_v6, %v2076_v11  ;;  %v2084_v13 = vsel %vm1022_vm2, %v2080_v10, 0.0 }
 0xb2a   : > { %2085 = vadd.xlane.f32.xlu1 %v2084_v13  ;;  %v2619_v14 = vpop.f32.mrf.mxu0 }
 0xb2b   : > { %v2081_v15 = vadd.f32 %v2077_v12, %v1908_v40 }
 0xb2d   : > { %v2087_v16 = vsel %vm1022_vm2, %v2081_v15, 0.0 }
 0xb2e   : > { %2088 = vadd.xlane.f32.xlu0 %v2087_v16 }
 0xbb3   : > { %v2086_v17 = vpop.xlane.xlu1 %2085 }
 0xbb4   : > { %v2090_v33 = vmul.f32 0.03125, %v2086_v17 }
 0xbb6   : > { %v2092_v18 = vsub.f32 %v2080_v10, %v2090_v33 }
 0xbb7   : > { %v2089_v19 = vpop.xlane.xlu0 %2088 }
 0xbb8   : > { %v2091_v34 = vmul.f32 0.03125, %v2089_v19  ;;  %v2094_v20 = vmul.f32 %v2092_v18, %v2092_v18 }
 0xbba   : > { %v2093_v21 = vsub.f32 %v2081_v15, %v2091_v34  ;;  %v2096_v22 = vsel %vm1022_vm2, %v2094_v20, 0.0 }
 0xbbb   : > { %2097 = vadd.xlane.f32.xlu1 %v2096_v22 }
 0xbbc   : > { %v2095_v23 = vmul.f32 %v2093_v21, %v2093_v21 }
 0xbbe   : > { %v2099_v24 = vsel %vm1022_vm2, %v2095_v23, 0.0 }
 0xbbf   : > { %2100 = vadd.xlane.f32.xlu0 %v2099_v24 }
 0xc44   : > { %v2098_v25 = vpop.xlane.xlu1 %2097 }
 0xc45   : > { %v2102_v26 = vmul.f32 0.03125, %v2098_v25 }
 0xc47   : > { %v2104_v27 = vadd.f32 1e-12, %v2102_v26 }
 0xc48   : > { %v2101_v28 = vpop.xlane.xlu0 %2100 }
 0xc49   : > { %2705 = vrsqrt.f32 %v2104_v27  ;;  %v2103_v29 = vmul.f32 0.03125, %v2101_v28 }
 0xc4b   : > { %v2105_v30 = vadd.f32 1e-12, %v2103_v29 }
 0xc4d   : > { %2707 = vrsqrt.f32 %v2105_v30 }
 0xc56   : > { %v2706_v32 = vpop.eup %2705 }
 0xc57   : > { %v2108_v36 = vmul.f32 %v2706_v32, %v2092_v18 }
 0xc59   : > { %v2116_v39 = vmul.f32 %v2502_v35, %v2108_v36 }
 0xc5a   : > { %v2708_v40 = vpop.eup %2707 }
 0xc5b   : > { %v2124_v42 = vadd.f32 %v2503_v37, %v2116_v39  ;;  %v2109_v43 = vmul.f32 %v2708_v40, %v2093_v21 }
 0xc5d   : > { %2126 = vst.msk [vmem:[#allocation2] sm:$0xff] %vm1022_vm2, %v2124_v42  ;;  %v2117_v44 = vmul.f32 %v2502_v35, %v2109_v43  ;;  %2131 = sbr.rel (%p2504_p8) target bundleno = 3171 (0xc63), region = 92 }
 0xc5f   : > { %v2125_v41 = vadd.f32 %v2503_v37, %v2117_v44 }
 0xc61   : > { %2127 = vst.msk [vmem:[#allocation2 + $0x8] sm:$0xff] %vm1022_vm2, %v2125_v41 }
 0xc62   : > { %2132 = vst.msk [vmem:[%s2953_s30] sm:$0xff] %vm1022_vm2, %v2124_v42  ;;  %2133 = vst.msk [vmem:[%s2953_s30 + $0x8] sm:$0xff] %vm1022_vm2, %v2125_v41 }
 0xc63 PF: > { %s3231_s11 = sld [smem:[#allocation6_spill]] }
 0xc64   : > { %s3232_s21 = sld [smem:[#allocation4_spill]] }
 0xc65   : > { %s3233_s22 = sld [smem:[#allocation5_spill]] }
 0xc66   : > { %s3234_s23 = sld [smem:[#allocation7_spill]] }
 0xc67   : > { %s3235_s24 = sld [smem:[#allocation8_spill]] }
 0xc69   : > { %s26_s25 = sadd.s32 1, %s3231_s11  }
 0xc6a   : > { %p23_p9 = scmp.ge.s32.totalorder %s26_s25, 6  }
 0xc6c   :  { %25 = sbr.rel (!%p23_p9) target bundleno = 15 (0xf), region = 167 }

</bundles_post_ra>
